<compile_context>
chip_gen: v6e
topology: v6e:2x2x1
jax: 0.10.0
libtpu: 0.0.40
codegen_flags: <defaults>
</compile_context>

<pallas_src>
import functools

import jax
import jax.numpy as jnp
from jax import lax
from jax.experimental import pallas as pl
from jax.experimental.pallas import tpu as pltpu


def _sru_block_recurrence(u_ref, cg_ref, c_ref, unroll):
    """One SRU layer's elementwise recurrence over a whole time block.

    u_ref  : (TB*BB, 3H) pre-activations [x_tilde | f_pre | r_pre]; the gate
             columns are overwritten in place with their sigmoids.
    cg_ref : (TB*BB, H) work buffer; holds g_t, then c_t, then h_t on exit.
    c_ref  : (BB, H) cell carry; updated to the last step's cell state.
    """
    n_rows, three_h = u_ref.shape
    H = three_h // 3
    BB = c_ref.shape[0]
    TB = n_rows // BB

    # --- block-wide (slab) transcendentals: OFF the serial path (EUP) -------
    u_ref[:, pl.ds(H, 2 * H)] = jax.nn.sigmoid(u_ref[:, pl.ds(H, 2 * H)])
    # g_t = (1 - f_t) * x_tilde_t for every step at once (VPU slab).
    cg_ref[...] = (1.0 - u_ref[:, pl.ds(H, H)]) * u_ref[:, pl.ds(0, H)]

    # --- serial dependency: c_t = f_t * c_{t-1} + g_t (2 VPU ops / step) ----
    def step(s, c):
        row0 = pl.multiple_of(s * BB, BB)
        f_t = u_ref[pl.ds(row0, BB), pl.ds(H, H)]
        c = f_t * c + cg_ref[pl.ds(row0, BB), :]
        cg_ref[pl.ds(row0, BB), :] = c           # overwrite g_t with c_t
        return c

    c_ref[...] = lax.fori_loop(0, TB, step, c_ref[...], unroll=unroll)

    # --- h_t = r_t * tanh(c_t), block-wide (EUP + VPU slab) -----------------
    cg_ref[...] = u_ref[:, pl.ds(2 * H, H)] * jnp.tanh(cg_ref[...])


def _fused_sru2_kernel(x_ref, w1_ref, b1_ref, w2_ref, b2_ref, h2_ref,
                       c1_ref, c2_ref, u_ref, cg_ref):
    """Process one (batch tile, time block) of the fused two-layer SRU stack."""
    TB, BB, D = x_ref.shape
    H = w2_ref.shape[0]
    unroll = min(TB, 8)   # bound unroll so large time blocks don't spill vregs

    # First time block of this batch tile: reset both layers' cell states.
    @pl.when(pl.program_id(1) == 0)
    def _():
        c1_ref[...] = jnp.zeros_like(c1_ref)
        c2_ref[...] = jnp.zeros_like(c2_ref)

    # ---- layer-1 projection fused in: one (TB*BB, D) x (D, 3H) MXU matmul --
    x2d = x_ref[...].reshape(TB * BB, D)
    u_ref[...] = (jnp.dot(x2d, w1_ref[...], preferred_element_type=jnp.float32)
                  + b1_ref[...])
    _sru_block_recurrence(u_ref, cg_ref, c1_ref, unroll)       # cg <- h1 block

    # ---- layer-2 projection: one (TB*BB, H) x (H, 3H) MXU matmul -----------
    u_ref[...] = (jnp.dot(cg_ref[...], w2_ref[...],
                          preferred_element_type=jnp.float32) + b2_ref[...])
    _sru_block_recurrence(u_ref, cg_ref, c2_ref, unroll)       # cg <- h2 block

    h2_ref[...] = cg_ref[...].reshape(TB, BB, H).astype(h2_ref.dtype)


@functools.partial(jax.jit, static_argnames=("time_block", "batch_block"))
def multi_layer_sru(x, w1, b1, w2, b2, *, time_block=16, batch_block=None):
    """MultiLayerSRU forward.

    x: (T, B, input_size) float32
    returns (out, hidden_all):
      out        = last hidden state of layer 2, shape (B, H)
      hidden_all = all hidden states of layer 2, shape (T, B, H)
    """
    T, B, D = x.shape
    H = w2.shape[0]
    assert w1.shape == (D, 3 * H) and w2.shape == (H, 3 * H)
    assert b1.shape == (1, 3 * H) and b2.shape == (1, 3 * H)

    # Batch: pad to a multiple of 8 sublanes so the in-kernel 3D<->2D reshapes
    # are tile-preserving (no relayout).  Padded rows are sliced away below.
    B_pad = -(-B // 8) * 8
    if batch_block is None:
        BB = B_pad
    else:
        BB = max(8, (min(batch_block, B_pad) // 8) * 8)
        while B_pad % BB:
            BB -= 8
    n_btiles = B_pad // BB

    # Time: block the sequential axis; pad up to a multiple of the block.
    # NOTE: padded tail steps run the recurrence on garbage inputs; outputs are
    # sliced back to T and final cell states are not exposed, so it's harmless.
    TB = min(time_block, T)
    n_tblocks = -(-T // TB)
    T_pad = n_tblocks * TB
    if (T_pad, B_pad) != (T, B):
        x = jnp.pad(x, ((0, T_pad - T), (0, B_pad - B), (0, 0)))

    # VMEM budget: double-buffered I/O + weights + scratch, clamped to v7x's
    # 64 MiB physical VMEM (v5e/v6e have 128 MiB, so this is always safe).
    f32b = 4
    est = f32b * (2 * TB * BB * D + 2 * TB * BB * H
                  + 2 * (D + H + 2) * 3 * H
                  + 2 * BB * H + TB * BB * 4 * H)
    vmem_limit = int(min(max(2 * est, 32 << 20), 64 << 20))

    h_all2 = pl.pallas_call(
        _fused_sru2_kernel,
        out_shape=jax.ShapeDtypeStruct((T_pad, B_pad, H), jnp.float32),
        grid_spec=pltpu.PrefetchScalarGridSpec(
            num_scalar_prefetch=0,
            grid=(n_btiles, n_tblocks),
            in_specs=[
                pl.BlockSpec((TB, BB, D), lambda bt, i: (i, bt, 0)),   # x block
                pl.BlockSpec((D, 3 * H), lambda bt, i: (0, 0)),        # W1 (resident)
                pl.BlockSpec((1, 3 * H), lambda bt, i: (0, 0)),        # b1 (resident)
                pl.BlockSpec((H, 3 * H), lambda bt, i: (0, 0)),        # W2 (resident)
                pl.BlockSpec((1, 3 * H), lambda bt, i: (0, 0)),        # b2 (resident)
            ],
            out_specs=pl.BlockSpec((TB, BB, H), lambda bt, i: (i, bt, 0)),
            scratch_shapes=[
                pltpu.VMEM((BB, H), jnp.float32),            # c1 carry (persistent)
                pltpu.VMEM((BB, H), jnp.float32),            # c2 carry (persistent)
                pltpu.VMEM((TB * BB, 3 * H), jnp.float32),   # u (projection) block
                pltpu.VMEM((TB * BB, H), jnp.float32),       # g / c / h work block
            ],
        ),
        compiler_params=pltpu.CompilerParams(
            # Batch tiles are independent (megacore / v7x 2nd TC); the time
            # recurrence is sequential.
            dimension_semantics=("parallel", "arbitrary"),
            vmem_limit_bytes=vmem_limit,
        ),
    )(x, w1, b1, w2, b2)

    h_all2 = h_all2[:T, :B]
    return h_all2[-1], h_all2


def init_sru_params(key, input_size, hidden_size):
    """Deterministic nn.Linear-style init: U(-1/sqrt(in), 1/sqrt(in))."""
    k_w, k_b = jax.random.split(key)
    bound = 1.0 / jnp.sqrt(jnp.asarray(input_size, jnp.float32))
    w = jax.random.uniform(k_w, (input_size, 3 * hidden_size),
                           jnp.float32, -bound, bound)
    b = jax.random.uniform(k_b, (1, 3 * hidden_size),
                           jnp.float32, -bound, bound)
    return w, b


def _reference_sru_layer(x, w, b):
    """Pure-JAX reference for correctness checking."""
    T, B, D = x.shape
    H = w.shape[1] // 3

    def step(c, x_t):
        u = x_t @ w + b
        x_tilde = u[:, 0:H]
        f = jax.nn.sigmoid(u[:, H:2 * H])
        r = jax.nn.sigmoid(u[:, 2 * H:3 * H])
        c_new = f * c + (1.0 - f) * x_tilde
        h = r * jnp.tanh(c_new)
        return c_new, h

    c0 = jnp.zeros((B, H), jnp.float32)
    _, h_all = jax.lax.scan(step, c0, x)
    return h_all


def _reference_multi_layer_sru(x, w1, b1, w2, b2):
    h1 = _reference_sru_layer(x, w1, b1)
    h2 = _reference_sru_layer(h1, w2, b2)
    return h2[-1], h2


def _check(x, w1, b1, w2, b2, **kw):
    out, h_all = multi_layer_sru(x, w1, b1, w2, b2, **kw)
    out = jax.block_until_ready(out)
    h_all = jax.block_until_ready(h_all)
    ref_out, ref_all = _reference_multi_layer_sru(x, w1, b1, w2, b2)
    assert h_all.shape == ref_all.shape and out.shape == ref_out.shape
    # Tolerances allow for TPU matmul precision differences (kernel MXU vs XLA
    # reference); genuine bugs produce errors orders of magnitude larger.
    err = float(jnp.max(jnp.abs(h_all - ref_all)))
    assert jnp.allclose(h_all, ref_all, atol=5e-3, rtol=5e-3), err
    assert jnp.allclose(out, ref_out, atol=5e-3, rtol=5e-3)
    return out, h_all


if __name__ == "__main__":
    # Small deterministic example.  hidden_size=128 keeps gate slices and the
    # output store lane-aligned; T=12 with time_block=8 exercises multi-block
    # cell-state carry plus the time-padding path; B=4 exercises batch padding.
    T, B = 12, 4
    input_size = 8
    hidden_size = 128

    root = jax.random.PRNGKey(0)
    k_x, k_l1, k_l2, k_x2 = jax.random.split(root, 4)

    x = jax.random.normal(k_x, (T, B, input_size), jnp.float32)
    w1, b1 = init_sru_params(k_l1, input_size, hidden_size)
    w2, b2 = init_sru_params(k_l2, hidden_size, hidden_size)

    out, hidden_all = _check(x, w1, b1, w2, b2, time_block=8)
    assert out.shape == (B, hidden_size)
    assert hidden_all.shape == (T, B, hidden_size)

    # Second config: multiple batch tiles on the 'parallel' grid axis
    # (v7x two-TensorCore path) and a different time block with padding.
    x2 = jax.random.normal(k_x2, (9, 16, input_size), jnp.float32)
    _check(x2, w1, b1, w2, b2, time_block=4, batch_block=8)

    print("KERNEL_OK")
</pallas_src>

<mosaic_0001>
module attributes {stable_mosaic.version = 11 : i64} {
  func.func @_fused_sru2_kernel(%arg0: i32, %arg1: i32, %arg2: memref<8x8x8xf32, #tpu.memory_space<vmem>>, %arg3: memref<8x384xf32, #tpu.memory_space<vmem>>, %arg4: memref<1x384xf32, #tpu.memory_space<vmem>>, %arg5: memref<128x384xf32, #tpu.memory_space<vmem>>, %arg6: memref<1x384xf32, #tpu.memory_space<vmem>>, %arg7: memref<8x8x128xf32, #tpu.memory_space<vmem>>, %arg8: memref<8x128xf32, #tpu.memory_space<vmem>>, %arg9: memref<8x128xf32, #tpu.memory_space<vmem>>, %arg10: memref<64x384xf32, #tpu.memory_space<vmem>>, %arg11: memref<64x128xf32, #tpu.memory_space<vmem>>) attributes {dimension_semantics = [#tpu.dimension_semantics<parallel>, #tpu.dimension_semantics<arbitrary>], iteration_bounds = array<i64: 1, 2>, scalar_prefetch = 0 : i64, scratch_operands = 4 : i64, tpu.core_type = #tpu.core_type<tc>, window_params = [{transform_indices = @transform_0, window_bounds = array<i64: 8, 8, 8>}, {pipeline_mode = #tpu.pipeline_mode<synchronous>, transform_indices = @transform_1, window_bounds = array<i64: 8, 384>}, {pipeline_mode = #tpu.pipeline_mode<synchronous>, transform_indices = @transform_2, window_bounds = array<i64: 1, 384>}, {pipeline_mode = #tpu.pipeline_mode<synchronous>, transform_indices = @transform_3, window_bounds = array<i64: 128, 384>}, {pipeline_mode = #tpu.pipeline_mode<synchronous>, transform_indices = @transform_4, window_bounds = array<i64: 1, 384>}, {transform_indices = @transform_5, window_bounds = array<i64: 8, 8, 128>}]} {
    %c0_i32 = arith.constant 0 : i32
    %0 = arith.cmpi eq, %arg1, %c0_i32 : i32
    %1 = arith.extui %0 : i1 to i32
    %c0_i32_0 = arith.constant 0 : i32
    %2 = arith.cmpi ne, %1, %c0_i32_0 : i32
    scf.if %2 {
      %cst_139 = arith.constant 0.000000e+00 : f32
      %221 = vector.broadcast %cst_139 : f32 to vector<8x128xf32>
      %c0_140 = arith.constant 0 : index
      %c0_141 = arith.constant 0 : index
      %222 = vector.load %arg8[%c0_140, %c0_141] : memref<8x128xf32, #tpu.memory_space<vmem>>, vector<8x128xf32>
      tpu.vector_store %arg8[%c0_140, %c0_141], %221 {strides = array<i32>} : memref<8x128xf32, #tpu.memory_space<vmem>>, vector<8x128xf32>,
      %cst_142 = arith.constant 0.000000e+00 : f32
      %223 = vector.broadcast %cst_142 : f32 to vector<8x128xf32>
      %c0_143 = arith.constant 0 : index
      %c0_144 = arith.constant 0 : index
      %224 = vector.load %arg9[%c0_143, %c0_144] : memref<8x128xf32, #tpu.memory_space<vmem>>, vector<8x128xf32>
      tpu.vector_store %arg9[%c0_143, %c0_144], %223 {strides = array<i32>} : memref<8x128xf32, #tpu.memory_space<vmem>>, vector<8x128xf32>,
    } else {
    }
    %c0 = arith.constant 0 : index
    %c0_1 = arith.constant 0 : index
    %c0_2 = arith.constant 0 : index
    %3 = vector.load %arg2[%c0, %c0_1, %c0_2] : memref<8x8x8xf32, #tpu.memory_space<vmem>>, vector<8x8x8xf32>
    %4 = vector.shape_cast %3 : vector<8x8x8xf32> to vector<64x8xf32>
    %c0_3 = arith.constant 0 : index
    %c0_4 = arith.constant 0 : index
    %5 = vector.load %arg3[%c0_3, %c0_4] : memref<8x384xf32, #tpu.memory_space<vmem>>, vector<8x384xf32>
    %cst = arith.constant dense<0.000000e+00> : vector<64x384xf32>
    %6 = tpu.matmul %4, %5, %cst {dimension_numbers = #tpu.dot_dimension_numbers<[1], [0], [0], [1], [0, 0, 1, 1], [], []>} : vector<64x8xf32>, vector<8x384xf32>, vector<64x384xf32> -> vector<64x384xf32>
    %c0_5 = arith.constant 0 : index
    %c0_6 = arith.constant 0 : index
    %7 = vector.load %arg4[%c0_5, %c0_6] : memref<1x384xf32, #tpu.memory_space<vmem>>, vector<1x384xf32>
    %8 = vector.broadcast %7 : vector<1x384xf32> to vector<64x384xf32>
    %9 = arith.addf %6, %8 : vector<64x384xf32>
    %c0_7 = arith.constant 0 : index
    %c0_8 = arith.constant 0 : index
    %10 = vector.load %arg10[%c0_7, %c0_8] : memref<64x384xf32, #tpu.memory_space<vmem>>, vector<64x384xf32>
    tpu.vector_store %arg10[%c0_7, %c0_8], %9 {strides = array<i32>} : memref<64x384xf32, #tpu.memory_space<vmem>>, vector<64x384xf32>,
    %c0_9 = arith.constant 0 : index
    %c128 = arith.constant 128 : index
    %11 = vector.load %arg10[%c0_9, %c128] : memref<64x384xf32, #tpu.memory_space<vmem>>, vector<64x256xf32>
    %12 = arith.negf %11 : vector<64x256xf32>
    %13 = math.exp %12 : vector<64x256xf32>
    %cst_10 = arith.constant 1.000000e+00 : f32
    %14 = vector.broadcast %cst_10 : f32 to vector<64x256xf32>
    %15 = arith.addf %14, %13 : vector<64x256xf32>
    %16 = arith.divf %14, %15 : vector<64x256xf32>
    %c0_11 = arith.constant 0 : index
    %c128_12 = arith.constant 128 : index
    %17 = vector.load %arg10[%c0_11, %c128_12] : memref<64x384xf32, #tpu.memory_space<vmem>>, vector<64x256xf32>
    tpu.vector_store %arg10[%c0_11, %c128_12], %16 {strides = array<i32>} : memref<64x384xf32, #tpu.memory_space<vmem>>, vector<64x256xf32>,
    %c0_13 = arith.constant 0 : index
    %c128_14 = arith.constant 128 : index
    %18 = vector.load %arg10[%c0_13, %c128_14] : memref<64x384xf32, #tpu.memory_space<vmem>>, vector<64x128xf32>
    %cst_15 = arith.constant 1.000000e+00 : f32
    %19 = vector.broadcast %cst_15 : f32 to vector<64x128xf32>
    %20 = arith.subf %19, %18 : vector<64x128xf32>
    %c0_16 = arith.constant 0 : index
    %c0_17 = arith.constant 0 : index
    %21 = vector.load %arg10[%c0_16, %c0_17] : memref<64x384xf32, #tpu.memory_space<vmem>>, vector<64x128xf32>
    %22 = arith.mulf %20, %21 : vector<64x128xf32>
    %c0_18 = arith.constant 0 : index
    %c0_19 = arith.constant 0 : index
    %23 = vector.load %arg11[%c0_18, %c0_19] : memref<64x128xf32, #tpu.memory_space<vmem>>, vector<64x128xf32>
    tpu.vector_store %arg11[%c0_18, %c0_19], %22 {strides = array<i32>} : memref<64x128xf32, #tpu.memory_space<vmem>>, vector<64x128xf32>,
    %c0_20 = arith.constant 0 : index
    %c0_21 = arith.constant 0 : index
    %24 = vector.load %arg8[%c0_20, %c0_21] : memref<8x128xf32, #tpu.memory_space<vmem>>, vector<8x128xf32>
    %c0_i32_22 = arith.constant 0 : i32
    %c8_i32 = arith.constant 8 : i32
    %25 = arith.muli %c0_i32_22, %c8_i32 : i32
    %26 = tpu.assume_multiple %25, 8 : i32
    %27 = arith.index_cast %26 : i32 to index
    %c128_23 = arith.constant 128 : index
    %28 = vector.load %arg10[%27, %c128_23] : memref<64x384xf32, #tpu.memory_space<vmem>>, vector<8x128xf32>
    %29 = arith.mulf %28, %24 : vector<8x128xf32>
    %30 = arith.index_cast %26 : i32 to index
    %c0_24 = arith.constant 0 : index
    %31 = vector.load %arg11[%30, %c0_24] : memref<64x128xf32, #tpu.memory_space<vmem>>, vector<8x128xf32>
    %32 = arith.addf %29, %31 : vector<8x128xf32>
    %33 = arith.index_cast %26 : i32 to index
    %c0_25 = arith.constant 0 : index
    %34 = vector.load %arg11[%33, %c0_25] : memref<64x128xf32, #tpu.memory_space<vmem>>, vector<8x128xf32>
    tpu.vector_store %arg11[%33, %c0_25], %32 {strides = array<i32>} : memref<64x128xf32, #tpu.memory_space<vmem>>, vector<8x128xf32>,
    %c1_i32 = arith.constant 1 : i32
    %c8_i32_26 = arith.constant 8 : i32
    %35 = arith.muli %c1_i32, %c8_i32_26 : i32
    %36 = tpu.assume_multiple %35, 8 : i32
    %37 = arith.index_cast %36 : i32 to index
    %c128_27 = arith.constant 128 : index
    %38 = vector.load %arg10[%37, %c128_27] : memref<64x384xf32, #tpu.memory_space<vmem>>, vector<8x128xf32>
    %39 = arith.mulf %38, %32 : vector<8x128xf32>
    %40 = arith.index_cast %36 : i32 to index
    %c0_28 = arith.constant 0 : index
    %41 = vector.load %arg11[%40, %c0_28] : memref<64x128xf32, #tpu.memory_space<vmem>>, vector<8x128xf32>
    %42 = arith.addf %39, %41 : vector<8x128xf32>
    %43 = arith.index_cast %36 : i32 to index
    %c0_29 = arith.constant 0 : index
    %44 = vector.load %arg11[%43, %c0_29] : memref<64x128xf32, #tpu.memory_space<vmem>>, vector<8x128xf32>
    tpu.vector_store %arg11[%43, %c0_29], %42 {strides = array<i32>} : memref<64x128xf32, #tpu.memory_space<vmem>>, vector<8x128xf32>,
    %c2_i32 = arith.constant 2 : i32
    %c8_i32_30 = arith.constant 8 : i32
    %45 = arith.muli %c2_i32, %c8_i32_30 : i32
    %46 = tpu.assume_multiple %45, 8 : i32
    %47 = arith.index_cast %46 : i32 to index
    %c128_31 = arith.constant 128 : index
    %48 = vector.load %arg10[%47, %c128_31] : memref<64x384xf32, #tpu.memory_space<vmem>>, vector<8x128xf32>
    %49 = arith.mulf %48, %42 : vector<8x128xf32>
    %50 = arith.index_cast %46 : i32 to index
    %c0_32 = arith.constant 0 : index
    %51 = vector.load %arg11[%50, %c0_32] : memref<64x128xf32, #tpu.memory_space<vmem>>, vector<8x128xf32>
    %52 = arith.addf %49, %51 : vector<8x128xf32>
    %53 = arith.index_cast %46 : i32 to index
    %c0_33 = arith.constant 0 : index
    %54 = vector.load %arg11[%53, %c0_33] : memref<64x128xf32, #tpu.memory_space<vmem>>, vector<8x128xf32>
    tpu.vector_store %arg11[%53, %c0_33], %52 {strides = array<i32>} : memref<64x128xf32, #tpu.memory_space<vmem>>, vector<8x128xf32>,
    %c3_i32 = arith.constant 3 : i32
    %c8_i32_34 = arith.constant 8 : i32
    %55 = arith.muli %c3_i32, %c8_i32_34 : i32
    %56 = tpu.assume_multiple %55, 8 : i32
    %57 = arith.index_cast %56 : i32 to index
    %c128_35 = arith.constant 128 : index
    %58 = vector.load %arg10[%57, %c128_35] : memref<64x384xf32, #tpu.memory_space<vmem>>, vector<8x128xf32>
    %59 = arith.mulf %58, %52 : vector<8x128xf32>
    %60 = arith.index_cast %56 : i32 to index
    %c0_36 = arith.constant 0 : index
    %61 = vector.load %arg11[%60, %c0_36] : memref<64x128xf32, #tpu.memory_space<vmem>>, vector<8x128xf32>
    %62 = arith.addf %59, %61 : vector<8x128xf32>
    %63 = arith.index_cast %56 : i32 to index
    %c0_37 = arith.constant 0 : index
    %64 = vector.load %arg11[%63, %c0_37] : memref<64x128xf32, #tpu.memory_space<vmem>>, vector<8x128xf32>
    tpu.vector_store %arg11[%63, %c0_37], %62 {strides = array<i32>} : memref<64x128xf32, #tpu.memory_space<vmem>>, vector<8x128xf32>,
    %c4_i32 = arith.constant 4 : i32
    %c8_i32_38 = arith.constant 8 : i32
    %65 = arith.muli %c4_i32, %c8_i32_38 : i32
    %66 = tpu.assume_multiple %65, 8 : i32
    %67 = arith.index_cast %66 : i32 to index
    %c128_39 = arith.constant 128 : index
    %68 = vector.load %arg10[%67, %c128_39] : memref<64x384xf32, #tpu.memory_space<vmem>>, vector<8x128xf32>
    %69 = arith.mulf %68, %62 : vector<8x128xf32>
    %70 = arith.index_cast %66 : i32 to index
    %c0_40 = arith.constant 0 : index
    %71 = vector.load %arg11[%70, %c0_40] : memref<64x128xf32, #tpu.memory_space<vmem>>, vector<8x128xf32>
    %72 = arith.addf %69, %71 : vector<8x128xf32>
    %73 = arith.index_cast %66 : i32 to index
    %c0_41 = arith.constant 0 : index
    %74 = vector.load %arg11[%73, %c0_41] : memref<64x128xf32, #tpu.memory_space<vmem>>, vector<8x128xf32>
    tpu.vector_store %arg11[%73, %c0_41], %72 {strides = array<i32>} : memref<64x128xf32, #tpu.memory_space<vmem>>, vector<8x128xf32>,
    %c5_i32 = arith.constant 5 : i32
    %c8_i32_42 = arith.constant 8 : i32
    %75 = arith.muli %c5_i32, %c8_i32_42 : i32
    %76 = tpu.assume_multiple %75, 8 : i32
    %77 = arith.index_cast %76 : i32 to index
    %c128_43 = arith.constant 128 : index
    %78 = vector.load %arg10[%77, %c128_43] : memref<64x384xf32, #tpu.memory_space<vmem>>, vector<8x128xf32>
    %79 = arith.mulf %78, %72 : vector<8x128xf32>
    %80 = arith.index_cast %76 : i32 to index
    %c0_44 = arith.constant 0 : index
    %81 = vector.load %arg11[%80, %c0_44] : memref<64x128xf32, #tpu.memory_space<vmem>>, vector<8x128xf32>
    %82 = arith.addf %79, %81 : vector<8x128xf32>
    %83 = arith.index_cast %76 : i32 to index
    %c0_45 = arith.constant 0 : index
    %84 = vector.load %arg11[%83, %c0_45] : memref<64x128xf32, #tpu.memory_space<vmem>>, vector<8x128xf32>
    tpu.vector_store %arg11[%83, %c0_45], %82 {strides = array<i32>} : memref<64x128xf32, #tpu.memory_space<vmem>>, vector<8x128xf32>,
    %c6_i32 = arith.constant 6 : i32
    %c8_i32_46 = arith.constant 8 : i32
    %85 = arith.muli %c6_i32, %c8_i32_46 : i32
    %86 = tpu.assume_multiple %85, 8 : i32
    %87 = arith.index_cast %86 : i32 to index
    %c128_47 = arith.constant 128 : index
    %88 = vector.load %arg10[%87, %c128_47] : memref<64x384xf32, #tpu.memory_space<vmem>>, vector<8x128xf32>
    %89 = arith.mulf %88, %82 : vector<8x128xf32>
    %90 = arith.index_cast %86 : i32 to index
    %c0_48 = arith.constant 0 : index
    %91 = vector.load %arg11[%90, %c0_48] : memref<64x128xf32, #tpu.memory_space<vmem>>, vector<8x128xf32>
    %92 = arith.addf %89, %91 : vector<8x128xf32>
    %93 = arith.index_cast %86 : i32 to index
    %c0_49 = arith.constant 0 : index
    %94 = vector.load %arg11[%93, %c0_49] : memref<64x128xf32, #tpu.memory_space<vmem>>, vector<8x128xf32>
    tpu.vector_store %arg11[%93, %c0_49], %92 {strides = array<i32>} : memref<64x128xf32, #tpu.memory_space<vmem>>, vector<8x128xf32>,
    %c7_i32 = arith.constant 7 : i32
    %c8_i32_50 = arith.constant 8 : i32
    %95 = arith.muli %c7_i32, %c8_i32_50 : i32
    %96 = tpu.assume_multiple %95, 8 : i32
    %97 = arith.index_cast %96 : i32 to index
    %c128_51 = arith.constant 128 : index
    %98 = vector.load %arg10[%97, %c128_51] : memref<64x384xf32, #tpu.memory_space<vmem>>, vector<8x128xf32>
    %99 = arith.mulf %98, %92 : vector<8x128xf32>
    %100 = arith.index_cast %96 : i32 to index
    %c0_52 = arith.constant 0 : index
    %101 = vector.load %arg11[%100, %c0_52] : memref<64x128xf32, #tpu.memory_space<vmem>>, vector<8x128xf32>
    %102 = arith.addf %99, %101 : vector<8x128xf32>
    %103 = arith.index_cast %96 : i32 to index
    %c0_53 = arith.constant 0 : index
    %104 = vector.load %arg11[%103, %c0_53] : memref<64x128xf32, #tpu.memory_space<vmem>>, vector<8x128xf32>
    tpu.vector_store %arg11[%103, %c0_53], %102 {strides = array<i32>} : memref<64x128xf32, #tpu.memory_space<vmem>>, vector<8x128xf32>,
    %c8_i32_54 = arith.constant 8 : i32
    %c0_55 = arith.constant 0 : index
    %c0_56 = arith.constant 0 : index
    %105 = vector.load %arg8[%c0_55, %c0_56] : memref<8x128xf32, #tpu.memory_space<vmem>>, vector<8x128xf32>
    tpu.vector_store %arg8[%c0_55, %c0_56], %102 {strides = array<i32>} : memref<8x128xf32, #tpu.memory_space<vmem>>, vector<8x128xf32>,
    %c0_57 = arith.constant 0 : index
    %c256 = arith.constant 256 : index
    %106 = vector.load %arg10[%c0_57, %c256] : memref<64x384xf32, #tpu.memory_space<vmem>>, vector<64x128xf32>
    %c0_58 = arith.constant 0 : index
    %c0_59 = arith.constant 0 : index
    %107 = vector.load %arg11[%c0_58, %c0_59] : memref<64x128xf32, #tpu.memory_space<vmem>>, vector<64x128xf32>
    %108 = math.tanh %107 : vector<64x128xf32>
    %109 = arith.mulf %106, %108 : vector<64x128xf32>
    %c0_60 = arith.constant 0 : index
    %c0_61 = arith.constant 0 : index
    %110 = vector.load %arg11[%c0_60, %c0_61] : memref<64x128xf32, #tpu.memory_space<vmem>>, vector<64x128xf32>
    tpu.vector_store %arg11[%c0_60, %c0_61], %109 {strides = array<i32>} : memref<64x128xf32, #tpu.memory_space<vmem>>, vector<64x128xf32>,
    %c0_62 = arith.constant 0 : index
    %c0_63 = arith.constant 0 : index
    %111 = vector.load %arg11[%c0_62, %c0_63] : memref<64x128xf32, #tpu.memory_space<vmem>>, vector<64x128xf32>
    %c0_64 = arith.constant 0 : index
    %c0_65 = arith.constant 0 : index
    %112 = vector.load %arg5[%c0_64, %c0_65] : memref<128x384xf32, #tpu.memory_space<vmem>>, vector<128x384xf32>
    %cst_66 = arith.constant dense<0.000000e+00> : vector<64x384xf32>
    %113 = tpu.matmul %111, %112, %cst_66 {dimension_numbers = #tpu.dot_dimension_numbers<[1], [0], [0], [1], [0, 0, 1, 1], [], []>} : vector<64x128xf32>, vector<128x384xf32>, vector<64x384xf32> -> vector<64x384xf32>
    %c0_67 = arith.constant 0 : index
    %c0_68 = arith.constant 0 : index
    %114 = vector.load %arg6[%c0_67, %c0_68] : memref<1x384xf32, #tpu.memory_space<vmem>>, vector<1x384xf32>
    %115 = vector.broadcast %114 : vector<1x384xf32> to vector<64x384xf32>
    %116 = arith.addf %113, %115 : vector<64x384xf32>
    %c0_69 = arith.constant 0 : index
    %c0_70 = arith.constant 0 : index
    %117 = vector.load %arg10[%c0_69, %c0_70] : memref<64x384xf32, #tpu.memory_space<vmem>>, vector<64x384xf32>
    tpu.vector_store %arg10[%c0_69, %c0_70], %116 {strides = array<i32>} : memref<64x384xf32, #tpu.memory_space<vmem>>, vector<64x384xf32>,
    %c0_71 = arith.constant 0 : index
    %c128_72 = arith.constant 128 : index
    %118 = vector.load %arg10[%c0_71, %c128_72] : memref<64x384xf32, #tpu.memory_space<vmem>>, vector<64x256xf32>
    %119 = arith.negf %118 : vector<64x256xf32>
    %120 = math.exp %119 : vector<64x256xf32>
    %cst_73 = arith.constant 1.000000e+00 : f32
    %121 = vector.broadcast %cst_73 : f32 to vector<64x256xf32>
    %122 = arith.addf %121, %120 : vector<64x256xf32>
    %123 = arith.divf %121, %122 : vector<64x256xf32>
    %c0_74 = arith.constant 0 : index
    %c128_75 = arith.constant 128 : index
    %124 = vector.load %arg10[%c0_74, %c128_75] : memref<64x384xf32, #tpu.memory_space<vmem>>, vector<64x256xf32>
    tpu.vector_store %arg10[%c0_74, %c128_75], %123 {strides = array<i32>} : memref<64x384xf32, #tpu.memory_space<vmem>>, vector<64x256xf32>,
    %c0_76 = arith.constant 0 : index
    %c128_77 = arith.constant 128 : index
    %125 = vector.load %arg10[%c0_76, %c128_77] : memref<64x384xf32, #tpu.memory_space<vmem>>, vector<64x128xf32>
    %cst_78 = arith.constant 1.000000e+00 : f32
    %126 = vector.broadcast %cst_78 : f32 to vector<64x128xf32>
    %127 = arith.subf %126, %125 : vector<64x128xf32>
    %c0_79 = arith.constant 0 : index
    %c0_80 = arith.constant 0 : index
    %128 = vector.load %arg10[%c0_79, %c0_80] : memref<64x384xf32, #tpu.memory_space<vmem>>, vector<64x128xf32>
    %129 = arith.mulf %127, %128 : vector<64x128xf32>
    %c0_81 = arith.constant 0 : index
    %c0_82 = arith.constant 0 : index
    %130 = vector.load %arg11[%c0_81, %c0_82] : memref<64x128xf32, #tpu.memory_space<vmem>>, vector<64x128xf32>
    tpu.vector_store %arg11[%c0_81, %c0_82], %129 {strides = array<i32>} : memref<64x128xf32, #tpu.memory_space<vmem>>, vector<64x128xf32>,
    %c0_83 = arith.constant 0 : index
    %c0_84 = arith.constant 0 : index
    %131 = vector.load %arg9[%c0_83, %c0_84] : memref<8x128xf32, #tpu.memory_space<vmem>>, vector<8x128xf32>
    %c0_i32_85 = arith.constant 0 : i32
    %c8_i32_86 = arith.constant 8 : i32
    %132 = arith.muli %c0_i32_85, %c8_i32_86 : i32
    %133 = tpu.assume_multiple %132, 8 : i32
    %134 = arith.index_cast %133 : i32 to index
    %c128_87 = arith.constant 128 : index
    %135 = vector.load %arg10[%134, %c128_87] : memref<64x384xf32, #tpu.memory_space<vmem>>, vector<8x128xf32>
    %136 = arith.mulf %135, %131 : vector<8x128xf32>
    %137 = arith.index_cast %133 : i32 to index
    %c0_88 = arith.constant 0 : index
    %138 = vector.load %arg11[%137, %c0_88] : memref<64x128xf32, #tpu.memory_space<vmem>>, vector<8x128xf32>
    %139 = arith.addf %136, %138 : vector<8x128xf32>
    %140 = arith.index_cast %133 : i32 to index
    %c0_89 = arith.constant 0 : index
    %141 = vector.load %arg11[%140, %c0_89] : memref<64x128xf32, #tpu.memory_space<vmem>>, vector<8x128xf32>
    tpu.vector_store %arg11[%140, %c0_89], %139 {strides = array<i32>} : memref<64x128xf32, #tpu.memory_space<vmem>>, vector<8x128xf32>,
    %c1_i32_90 = arith.constant 1 : i32
    %c8_i32_91 = arith.constant 8 : i32
    %142 = arith.muli %c1_i32_90, %c8_i32_91 : i32
    %143 = tpu.assume_multiple %142, 8 : i32
    %144 = arith.index_cast %143 : i32 to index
    %c128_92 = arith.constant 128 : index
    %145 = vector.load %arg10[%144, %c128_92] : memref<64x384xf32, #tpu.memory_space<vmem>>, vector<8x128xf32>
    %146 = arith.mulf %145, %139 : vector<8x128xf32>
    %147 = arith.index_cast %143 : i32 to index
    %c0_93 = arith.constant 0 : index
    %148 = vector.load %arg11[%147, %c0_93] : memref<64x128xf32, #tpu.memory_space<vmem>>, vector<8x128xf32>
    %149 = arith.addf %146, %148 : vector<8x128xf32>
    %150 = arith.index_cast %143 : i32 to index
    %c0_94 = arith.constant 0 : index
    %151 = vector.load %arg11[%150, %c0_94] : memref<64x128xf32, #tpu.memory_space<vmem>>, vector<8x128xf32>
    tpu.vector_store %arg11[%150, %c0_94], %149 {strides = array<i32>} : memref<64x128xf32, #tpu.memory_space<vmem>>, vector<8x128xf32>,
    %c2_i32_95 = arith.constant 2 : i32
    %c8_i32_96 = arith.constant 8 : i32
    %152 = arith.muli %c2_i32_95, %c8_i32_96 : i32
    %153 = tpu.assume_multiple %152, 8 : i32
    %154 = arith.index_cast %153 : i32 to index
    %c128_97 = arith.constant 128 : index
    %155 = vector.load %arg10[%154, %c128_97] : memref<64x384xf32, #tpu.memory_space<vmem>>, vector<8x128xf32>
    %156 = arith.mulf %155, %149 : vector<8x128xf32>
    %157 = arith.index_cast %153 : i32 to index
    %c0_98 = arith.constant 0 : index
    %158 = vector.load %arg11[%157, %c0_98] : memref<64x128xf32, #tpu.memory_space<vmem>>, vector<8x128xf32>
    %159 = arith.addf %156, %158 : vector<8x128xf32>
    %160 = arith.index_cast %153 : i32 to index
    %c0_99 = arith.constant 0 : index
    %161 = vector.load %arg11[%160, %c0_99] : memref<64x128xf32, #tpu.memory_space<vmem>>, vector<8x128xf32>
    tpu.vector_store %arg11[%160, %c0_99], %159 {strides = array<i32>} : memref<64x128xf32, #tpu.memory_space<vmem>>, vector<8x128xf32>,
    %c3_i32_100 = arith.constant 3 : i32
    %c8_i32_101 = arith.constant 8 : i32
    %162 = arith.muli %c3_i32_100, %c8_i32_101 : i32
    %163 = tpu.assume_multiple %162, 8 : i32
    %164 = arith.index_cast %163 : i32 to index
    %c128_102 = arith.constant 128 : index
    %165 = vector.load %arg10[%164, %c128_102] : memref<64x384xf32, #tpu.memory_space<vmem>>, vector<8x128xf32>
    %166 = arith.mulf %165, %159 : vector<8x128xf32>
    %167 = arith.index_cast %163 : i32 to index
    %c0_103 = arith.constant 0 : index
    %168 = vector.load %arg11[%167, %c0_103] : memref<64x128xf32, #tpu.memory_space<vmem>>, vector<8x128xf32>
    %169 = arith.addf %166, %168 : vector<8x128xf32>
    %170 = arith.index_cast %163 : i32 to index
    %c0_104 = arith.constant 0 : index
    %171 = vector.load %arg11[%170, %c0_104] : memref<64x128xf32, #tpu.memory_space<vmem>>, vector<8x128xf32>
    tpu.vector_store %arg11[%170, %c0_104], %169 {strides = array<i32>} : memref<64x128xf32, #tpu.memory_space<vmem>>, vector<8x128xf32>,
    %c4_i32_105 = arith.constant 4 : i32
    %c8_i32_106 = arith.constant 8 : i32
    %172 = arith.muli %c4_i32_105, %c8_i32_106 : i32
    %173 = tpu.assume_multiple %172, 8 : i32
    %174 = arith.index_cast %173 : i32 to index
    %c128_107 = arith.constant 128 : index
    %175 = vector.load %arg10[%174, %c128_107] : memref<64x384xf32, #tpu.memory_space<vmem>>, vector<8x128xf32>
    %176 = arith.mulf %175, %169 : vector<8x128xf32>
    %177 = arith.index_cast %173 : i32 to index
    %c0_108 = arith.constant 0 : index
    %178 = vector.load %arg11[%177, %c0_108] : memref<64x128xf32, #tpu.memory_space<vmem>>, vector<8x128xf32>
    %179 = arith.addf %176, %178 : vector<8x128xf32>
    %180 = arith.index_cast %173 : i32 to index
    %c0_109 = arith.constant 0 : index
    %181 = vector.load %arg11[%180, %c0_109] : memref<64x128xf32, #tpu.memory_space<vmem>>, vector<8x128xf32>
    tpu.vector_store %arg11[%180, %c0_109], %179 {strides = array<i32>} : memref<64x128xf32, #tpu.memory_space<vmem>>, vector<8x128xf32>,
    %c5_i32_110 = arith.constant 5 : i32
    %c8_i32_111 = arith.constant 8 : i32
    %182 = arith.muli %c5_i32_110, %c8_i32_111 : i32
    %183 = tpu.assume_multiple %182, 8 : i32
    %184 = arith.index_cast %183 : i32 to index
    %c128_112 = arith.constant 128 : index
    %185 = vector.load %arg10[%184, %c128_112] : memref<64x384xf32, #tpu.memory_space<vmem>>, vector<8x128xf32>
    %186 = arith.mulf %185, %179 : vector<8x128xf32>
    %187 = arith.index_cast %183 : i32 to index
    %c0_113 = arith.constant 0 : index
    %188 = vector.load %arg11[%187, %c0_113] : memref<64x128xf32, #tpu.memory_space<vmem>>, vector<8x128xf32>
    %189 = arith.addf %186, %188 : vector<8x128xf32>
    %190 = arith.index_cast %183 : i32 to index
    %c0_114 = arith.constant 0 : index
    %191 = vector.load %arg11[%190, %c0_114] : memref<64x128xf32, #tpu.memory_space<vmem>>, vector<8x128xf32>
    tpu.vector_store %arg11[%190, %c0_114], %189 {strides = array<i32>} : memref<64x128xf32, #tpu.memory_space<vmem>>, vector<8x128xf32>,
    %c6_i32_115 = arith.constant 6 : i32
    %c8_i32_116 = arith.constant 8 : i32
    %192 = arith.muli %c6_i32_115, %c8_i32_116 : i32
    %193 = tpu.assume_multiple %192, 8 : i32
    %194 = arith.index_cast %193 : i32 to index
    %c128_117 = arith.constant 128 : index
    %195 = vector.load %arg10[%194, %c128_117] : memref<64x384xf32, #tpu.memory_space<vmem>>, vector<8x128xf32>
    %196 = arith.mulf %195, %189 : vector<8x128xf32>
    %197 = arith.index_cast %193 : i32 to index
    %c0_118 = arith.constant 0 : index
    %198 = vector.load %arg11[%197, %c0_118] : memref<64x128xf32, #tpu.memory_space<vmem>>, vector<8x128xf32>
    %199 = arith.addf %196, %198 : vector<8x128xf32>
    %200 = arith.index_cast %193 : i32 to index
    %c0_119 = arith.constant 0 : index
    %201 = vector.load %arg11[%200, %c0_119] : memref<64x128xf32, #tpu.memory_space<vmem>>, vector<8x128xf32>
    tpu.vector_store %arg11[%200, %c0_119], %199 {strides = array<i32>} : memref<64x128xf32, #tpu.memory_space<vmem>>, vector<8x128xf32>,
    %c7_i32_120 = arith.constant 7 : i32
    %c8_i32_121 = arith.constant 8 : i32
    %202 = arith.muli %c7_i32_120, %c8_i32_121 : i32
    %203 = tpu.assume_multiple %202, 8 : i32
    %204 = arith.index_cast %203 : i32 to index
    %c128_122 = arith.constant 128 : index
    %205 = vector.load %arg10[%204, %c128_122] : memref<64x384xf32, #tpu.memory_space<vmem>>, vector<8x128xf32>
    %206 = arith.mulf %205, %199 : vector<8x128xf32>
    %207 = arith.index_cast %203 : i32 to index
    %c0_123 = arith.constant 0 : index
    %208 = vector.load %arg11[%207, %c0_123] : memref<64x128xf32, #tpu.memory_space<vmem>>, vector<8x128xf32>
    %209 = arith.addf %206, %208 : vector<8x128xf32>
    %210 = arith.index_cast %203 : i32 to index
    %c0_124 = arith.constant 0 : index
    %211 = vector.load %arg11[%210, %c0_124] : memref<64x128xf32, #tpu.memory_space<vmem>>, vector<8x128xf32>
    tpu.vector_store %arg11[%210, %c0_124], %209 {strides = array<i32>} : memref<64x128xf32, #tpu.memory_space<vmem>>, vector<8x128xf32>,
    %c8_i32_125 = arith.constant 8 : i32
    %c0_126 = arith.constant 0 : index
    %c0_127 = arith.constant 0 : index
    %212 = vector.load %arg9[%c0_126, %c0_127] : memref<8x128xf32, #tpu.memory_space<vmem>>, vector<8x128xf32>
    tpu.vector_store %arg9[%c0_126, %c0_127], %209 {strides = array<i32>} : memref<8x128xf32, #tpu.memory_space<vmem>>, vector<8x128xf32>,
    %c0_128 = arith.constant 0 : index
    %c256_129 = arith.constant 256 : index
    %213 = vector.load %arg10[%c0_128, %c256_129] : memref<64x384xf32, #tpu.memory_space<vmem>>, vector<64x128xf32>
    %c0_130 = arith.constant 0 : index
    %c0_131 = arith.constant 0 : index
    %214 = vector.load %arg11[%c0_130, %c0_131] : memref<64x128xf32, #tpu.memory_space<vmem>>, vector<64x128xf32>
    %215 = math.tanh %214 : vector<64x128xf32>
    %216 = arith.mulf %213, %215 : vector<64x128xf32>
    %c0_132 = arith.constant 0 : index
    %c0_133 = arith.constant 0 : index
    %217 = vector.load %arg11[%c0_132, %c0_133] : memref<64x128xf32, #tpu.memory_space<vmem>>, vector<64x128xf32>
    tpu.vector_store %arg11[%c0_132, %c0_133], %216 {strides = array<i32>} : memref<64x128xf32, #tpu.memory_space<vmem>>, vector<64x128xf32>,
    %c0_134 = arith.constant 0 : index
    %c0_135 = arith.constant 0 : index
    %218 = vector.load %arg11[%c0_134, %c0_135] : memref<64x128xf32, #tpu.memory_space<vmem>>, vector<64x128xf32>
    %219 = vector.shape_cast %218 : vector<64x128xf32> to vector<8x8x128xf32>
    %c0_136 = arith.constant 0 : index
    %c0_137 = arith.constant 0 : index
    %c0_138 = arith.constant 0 : index
    %220 = vector.load %arg7[%c0_136, %c0_137, %c0_138] : memref<8x8x128xf32, #tpu.memory_space<vmem>>, vector<8x8x128xf32>
    tpu.vector_store %arg7[%c0_136, %c0_137, %c0_138], %219 {strides = array<i32>} : memref<8x8x128xf32, #tpu.memory_space<vmem>>, vector<8x8x128xf32>,
    return
  }
  func.func @transform_0(%arg0: i32, %arg1: i32) -> (i32, i32, i32) {
    %c0_i32 = arith.constant 0 : i32
    %c0_i32_0 = arith.constant 0 : i32
    return %arg1, %arg0, %c0_i32 : i32, i32, i32
  }
  func.func @transform_1(%arg0: i32, %arg1: i32) -> (i32, i32) {
    %c0_i32 = arith.constant 0 : i32
    %c0_i32_0 = arith.constant 0 : i32
    %c0_i32_1 = arith.constant 0 : i32
    return %c0_i32, %c0_i32_0 : i32, i32
  }
  func.func @transform_2(%arg0: i32, %arg1: i32) -> (i32, i32) {
    %c0_i32 = arith.constant 0 : i32
    %c0_i32_0 = arith.constant 0 : i32
    %c0_i32_1 = arith.constant 0 : i32
    return %c0_i32, %c0_i32_0 : i32, i32
  }
  func.func @transform_3(%arg0: i32, %arg1: i32) -> (i32, i32) {
    %c0_i32 = arith.constant 0 : i32
    %c0_i32_0 = arith.constant 0 : i32
    %c0_i32_1 = arith.constant 0 : i32
    return %c0_i32, %c0_i32_0 : i32, i32
  }
  func.func @transform_4(%arg0: i32, %arg1: i32) -> (i32, i32) {
    %c0_i32 = arith.constant 0 : i32
    %c0_i32_0 = arith.constant 0 : i32
    %c0_i32_1 = arith.constant 0 : i32
    return %c0_i32, %c0_i32_0 : i32, i32
  }
  func.func @transform_5(%arg0: i32, %arg1: i32) -> (i32, i32, i32) {
    %c0_i32 = arith.constant 0 : i32
    %c0_i32_0 = arith.constant 0 : i32
    return %arg1, %arg0, %c0_i32 : i32, i32, i32
  }
}

</mosaic_0001>

<bundles_post_ra>
// kernel: multi_layer_sru.1
= control target key start
LH: loop header
LB: loop body
LE: loop exit
PB: predicated region body
PF: predicated region fallthrough
CT: control target
= control target key end

     0   :  { %10 = vsyncpa [#allocation7], 0  ;;  %s1975_s18 = smov 0   ;;  %s1977_s19 = smov 0   ;;  %s2236_s0 = inlined_call_operand.vmem [shape: f32[16,8,8], index: 0, kind: input, shape index: {}]   ;;  %s2237_s1 = inlined_call_operand.vmem [shape: f32[8,384], index: 1, kind: input, shape index: {}]   ;;  %s2238_s2 = inlined_call_operand.vmem [shape: f32[1,384], index: 2, kind: input, shape index: {}]   ;;  %s2239_s3 = inlined_call_operand.hbm [shape: f32[128,384], index: 3, kind: input, shape index: {}]   ;;  %s2240_s4 = inlined_call_operand.vmem [shape: f32[1,384], index: 4, kind: input, shape index: {}]   ;;  %s2241_s5 = inlined_call_operand.vmem [shape: f32[16,8,128], index: 5, kind: output, shape index: {}]  }
   0x1   :  { %s1979_s20 = smov 0  }
   0x2 LB: > { %s1534_s21 = sadd.s32 4294967295, %s1938_s20   ;;  %s25_s22 = sadd.s32 1, %s1934_s19  ;;  %s1938_s20 = sphi %s1979_s20, %s16_s20   ;;  %s1934_s19 = sphi %s1977_s19, %s2245_s19   ;;  %s1930_s18 = sphi %s1975_s18, %s2244_s18  }
   0x3   : > { %p26_p0 = scmp.ge.s32.totalorder %s25_s22, 2  ;;  %p1536_p1 = scmp.ge.s32.totalorder %s1938_s20, 1 }
   0x4   : > { %p173_p2 = scmp.lt.s32.totalorder %s1938_s20, 3  ;;  %p2000_p4 = scmp.eq.s32.totalorder %s1534_s21, 0 }
   0x5   : > { %s2247_s22 = smov (%p26_p0, %s25_s22), 0  ;;  %s1940_s25 = smov [#allocation6]  }
   0x6   : > { %p1996_p3 = pnand %p1536_p1, %p173_p2  ;;  %s191_s26 = sshll.u32 %s1940_s25, 4  ;;  %s192_s26 = int_to_ptr.vmem [resolvable:$true] %s191_s26 }
   0x7   : > { %s1897_s27 = scalar_lea.vmem %s192_s26, 6144  ;;  %p1905_p11 = scmp.lt.s32.totalorder %s192_s26, %s192_s26 }
   0x8   : > { %p1691_p5 = pneg %p1996_p3  ;;  %p1898_p8 = scmp.ne.s32.totalorder %s192_s26, %s1897_s27 }
   0x9   : > { %p1906_p12 = scmp.lt.s32.totalorder %s1897_s27, %s1897_s27 }
   0xa   : > { %p1692_p6 = pnand %p2000_p4, %p1691_p5 }
   0xb   : > { %p1907_p13 = por %p1906_p12, %p1905_p11 }
   0xc   : > { %p1888_p7 = pneg %p1692_p6 }
   0xe   : > { %p1900_p9 = pnand %p1898_p8, %p1888_p7 }
  0x10   : > { %p1901_p10 = pneg %p1900_p9 }
  0x12   : > { %p1908_p0 = pnand %p1907_p13, %p1901_p10 }
  0x14   : > { %1911 = shalt.err (!%p1908_p0)
}
  0x15   : > { %s1941_s28 = smov 384   ;;  %s1942_s29 = smov 24  }
  0x16   : > { %1694 = dma.hbm_to_vmem [thread:$0]  (!%p1692_p6), %s2239_s3, 6144, %s192_s26, [#allocation7], %s1941_s28, %s1941_s28, %s1942_s29  }
  0x17   : > { %222 = sbr.rel (%p1996_p3) target bundleno = 574 (0x23e), region = 40 }
  0x1c   : > { %1925 = dma.done.wait (%p2000_p4), [#allocation7], 6144  }
  0x1d   : > { %1927 = vsyncadd (%p2000_p4), [#allocation7], 4294961152  ;;  %s1541_s7 = sshll.u32 %s1930_s18, 3  ;;  %p1545_p2 = scmp.ne.s32.totalorder %s1930_s18, 0 }
  0x1e   : > { %p257_p1 = scmp.lt.s32.totalorder %s1541_s7, 15 }
  0x1f   : > { %277 = sbr.rel (%p1545_p2) target bundleno = 38 (0x26), region = 48 }
  0x20   : > { %s2249_s7 = smov (!%p257_p1, %s1541_s7), 15 }
  0x21   : > { %s1542_s8 = sshll.u32 %s2249_s7, 3 }
  0x22   : > { %s2021_s11 = scalar_lea.vmem %s2236_s0, %s1542_s8  ;;  %s2026_s14 = scalar_lea.vmem %s2241_s5, %s1542_s8 }
  0x24   : > { %v1943_v0 = vmov 0.0  }
  0x25   : > { %278 = vst [vmem:[#allocation2] sm:$0xff] %v1943_v0  ;;  %279 = vst [vmem:[#allocation3] sm:$0xff] %v1943_v0 }
  0x26 PF: > { %v289_v1 = vld [vmem:[%s2237_s1 + $0x8] sm:$0xff]  ;;  %v288_v2 = vld [vmem:[%s2237_s1] sm:$0xff]  ;;  %vm308_vm0 = vcmask 64512   ;;  %v1944_v4 = vmov 0.0   ;;  %v290_v5 = vld [vmem:[%s2237_s1 + $0x10] sm:$0xff]  ;;  %v293_v61 = vlaneseq }
  0x27   : > { %v280_v3 = vld [vmem:[%s2021_s11] sm:$0xff]  ;;  %363 = vmatprep.subr.mxu0 %v289_v1  ;;  %397 = vmatprep.mubr.f32.mxu0 %v1944_v4  ;;  %v281_v6 = vld [vmem:[%s2021_s11 + $0x8] sm:$0xff]  ;;  %v282_v7 = vld [vmem:[%s2021_s11 + $0x10] sm:$0xff] }
  0x28   : > { %364 = vmatpush1.msra.mxu0 %v288_v2  ;;  %1631 = vmatprep.mubr.msk.f32.mxu1 %vm308_vm0, %v280_v3  ;;  %v283_v8 = vld [vmem:[%s2021_s11 + $0x18] sm:$0xff]  ;;  %v284_v9 = vld [vmem:[%s2021_s11 + $0x20] sm:$0xff]  ;;  %v285_v10 = vld [vmem:[%s2021_s11 + $0x28] sm:$0xff]  ;;  %v2071_v62 = vshrl.u32 %v293_v61, 7 }
  0x29   : > { %1546 = vmatmul.mubr.msk.f32.vlgmr.msra.gmra.mxu0 %vm308_vm0, %v280_v3  ;;  %1629 = vmatprep.subr.mxu1 %v290_v5  ;;  %v286_v11 = vld [vmem:[%s2021_s11 + $0x30] sm:$0xff]  ;;  %v287_v12 = vld [vmem:[%s2021_s11 + $0x38] sm:$0xff]  ;;  %v910_v13 = vld [vmem:[#allocation6 + $0x170] sm:$0xff] }
  0x2a   : > { %403 = vmatprep.mubr.f32.mxu0 %v1944_v4  ;;  %1630 = vmatpush3.msra.mxu1 %v290_v5  ;;  %v909_v14 = vld [vmem:[#allocation6 + $0x168] sm:$0xff]  ;;  %v907_v15 = vld [vmem:[#allocation6 + $0x158] sm:$0xff]  ;;  %v906_v16 = vld [vmem:[#allocation6 + $0x150] sm:$0xff]  ;;  %v299_v63 = vsub.s32 1, %v2071_v62 }
  0x2b   : > { %1632 = vmatmul.mubr.msk.f32.vlgmr.msra.gmra.mxu1 %vm308_vm0, %v281_v6  ;;  %929 = vmatprep.subr.mxu0 %v910_v13  ;;  %v904_v17 = vld [vmem:[#allocation6 + $0x140] sm:$0xff]  ;;  %v911_v18 = vld [vmem:[#allocation6 + $0x178] sm:$0xff]  ;;  %v901_v20 = vld [vmem:[#allocation6 + $0x128] sm:$0xff] }
  0x2c   : > { %1634 = vmatprep.mubr.msk.f32.mxu1 %vm308_vm0, %v282_v7  ;;  %930 = vmatpush1.msra.mxu0 %v909_v14  ;;  %v903_v19 = vld [vmem:[#allocation6 + $0x138] sm:$0xff]  ;;  %v908_v21 = vld [vmem:[#allocation6 + $0x160] sm:$0xff]  ;;  %v898_v23 = vld [vmem:[#allocation6 + $0x110] sm:$0xff] }
  0x2d   : > { %1547 = vmatmul.mubr.msk.f32.gmra.mxu0 %vm308_vm0, %v281_v6  ;;  %931 = vmatprep.subr.mxu0 %v907_v15  ;;  %v900_v22 = vld [vmem:[#allocation6 + $0x120] sm:$0xff]  ;;  %v905_v24 = vld [vmem:[#allocation6 + $0x148] sm:$0xff]  ;;  %v895_v26 = vld [vmem:[#allocation6 + $0xf8] sm:$0xff] }
  0x2e   : > { %409 = vmatprep.mubr.f32.mxu0 %v1944_v4  ;;  %932 = vmatpush1.msra.mxu0 %v906_v16  ;;  %v897_v25 = vld [vmem:[#allocation6 + $0x108] sm:$0xff]  ;;  %v902_v27 = vld [vmem:[#allocation6 + $0x130] sm:$0xff]  ;;  %v892_v29 = vld [vmem:[#allocation6 + $0xe0] sm:$0xff] }
  0x2f   : > { %1635 = vmatmul.mubr.msk.f32.gmra.mxu1 %vm308_vm0, %v283_v8  ;;  %933 = vmatprep.subr.mxu0 %v904_v17  ;;  %v894_v28 = vld [vmem:[#allocation6 + $0xf0] sm:$0xff]  ;;  %v899_v30 = vld [vmem:[#allocation6 + $0x118] sm:$0xff]  ;;  %v889_v32 = vld [vmem:[#allocation6 + $0xc8] sm:$0xff] }
  0x30   : > { %1637 = vmatprep.mubr.msk.f32.mxu1 %vm308_vm0, %v284_v9  ;;  %1643 = vmatprep.subr.mxu1 %v911_v18  ;;  %v891_v31 = vld [vmem:[#allocation6 + $0xd8] sm:$0xff]  ;;  %v896_v33 = vld [vmem:[#allocation6 + $0x100] sm:$0xff]  ;;  %v886_v35 = vld [vmem:[#allocation6 + $0xb0] sm:$0xff] }
  0x31   : > { %1548 = vmatmul.mubr.msk.f32.gmra.mxu0 %vm308_vm0, %v282_v7  ;;  %1644 = vmatpush3.msra.mxu1 %v911_v18  ;;  %v888_v34 = vld [vmem:[#allocation6 + $0xc0] sm:$0xff]  ;;  %v893_v36 = vld [vmem:[#allocation6 + $0xe8] sm:$0xff]  ;;  %v883_v38 = vld [vmem:[#allocation6 + $0x98] sm:$0xff] }
  0x32   : > { %415 = vmatprep.mubr.f32.mxu0 %v1944_v4  ;;  %934 = vmatpush1.msra.mxu0 %v903_v19  ;;  %v885_v37 = vld [vmem:[#allocation6 + $0xa8] sm:$0xff]  ;;  %v890_v39 = vld [vmem:[#allocation6 + $0xd0] sm:$0xff]  ;;  %v880_v41 = vld [vmem:[#allocation6 + $0x80] sm:$0xff] }
  0x33   : > { %1638 = vmatmul.mubr.msk.f32.gmra.mxu1 %vm308_vm0, %v285_v10  ;;  %935 = vmatprep.subr.mxu0 %v901_v20  ;;  %v882_v40 = vld [vmem:[#allocation6 + $0x90] sm:$0xff]  ;;  %v887_v42 = vld [vmem:[#allocation6 + $0xb8] sm:$0xff]  ;;  %v877_v44 = vld [vmem:[#allocation6 + $0x68] sm:$0xff] }
  0x34   : > { %1640 = vmatprep.mubr.msk.f32.mxu1 %vm308_vm0, %v286_v11  ;;  %1645 = vmatprep.subr.mxu1 %v908_v21  ;;  %v879_v43 = vld [vmem:[#allocation6 + $0x78] sm:$0xff]  ;;  %v884_v45 = vld [vmem:[#allocation6 + $0xa0] sm:$0xff]  ;;  %v874_v47 = vld [vmem:[#allocation6 + $0x50] sm:$0xff] }
  0x35   : > { %1549 = vmatmul.mubr.msk.f32.gmra.mxu0 %vm308_vm0, %v283_v8  ;;  %1646 = vmatpush3.msra.mxu1 %v908_v21  ;;  %v876_v46 = vld [vmem:[#allocation6 + $0x60] sm:$0xff]  ;;  %v881_v48 = vld [vmem:[#allocation6 + $0x88] sm:$0xff]  ;;  %v871_v50 = vld [vmem:[#allocation6 + $0x38] sm:$0xff] }
  0x36   : > { %421 = vmatprep.mubr.f32.mxu0 %v1944_v4  ;;  %936 = vmatpush1.msra.mxu0 %v900_v22  ;;  %v873_v49 = vld [vmem:[#allocation6 + $0x48] sm:$0xff]  ;;  %v878_v51 = vld [vmem:[#allocation6 + $0x70] sm:$0xff]  ;;  %v868_v53 = vld [vmem:[#allocation6 + $0x20] sm:$0xff] }
  0x37   : > { %1641 = vmatmul.mubr.msk.f32.gmra.mxu1 %vm308_vm0, %v287_v12  ;;  %937 = vmatprep.subr.mxu0 %v898_v23  ;;  %v870_v52 = vld [vmem:[#allocation6 + $0x30] sm:$0xff]  ;;  %v875_v54 = vld [vmem:[#allocation6 + $0x58] sm:$0xff]  ;;  %v865_v56 = vld [vmem:[#allocation6 + $0x8] sm:$0xff] }
  0x38   : > { %1647 = vmatprep.subr.mxu1 %v905_v24  ;;  %938 = vmatpush1.msra.mxu0 %v897_v25  ;;  %v867_v55 = vld [vmem:[#allocation6 + $0x18] sm:$0xff]  ;;  %v872_v57 = vld [vmem:[#allocation6 + $0x40] sm:$0xff]  ;;  %v869_v59 = vld [vmem:[#allocation6 + $0x28] sm:$0xff] }
  0x39   : > { %1550 = vmatmul.mubr.msk.f32.gmra.mxu0 %vm308_vm0, %v284_v9  ;;  %1648 = vmatpush3.msra.mxu1 %v905_v24  ;;  %v864_v58 = vld [vmem:[#allocation6] sm:$0xff]  ;;  %v866_v60 = vld [vmem:[#allocation6 + $0x10] sm:$0xff]  ;;  %v303_v9 = vsub.s32 2, %v2071_v62 }
  0x3a   : > { %427 = vmatprep.mubr.f32.mxu0 %v1944_v4  ;;  %939 = vmatprep.subr.mxu0 %v895_v26  ;;  %v2077_v0 = vld [vmem:[%s2238_s2] sm:$0x7] }
  0x3b   : > { %1649 = vmatprep.subr.mxu1 %v902_v27  ;;  %940 = vmatpush1.msra.mxu0 %v894_v28  ;;  %v2082_v1 = vrot.slane %v2077_v0, %v299_v63  ;;  %v2096_v15 = vrot.slane %v2077_v0, %v303_v9 }
  0x3c   : > { %1650 = vmatpush3.msra.mxu1 %v902_v27  ;;  %941 = vmatprep.subr.mxu0 %v892_v29 }
  0x3d   : > { %1551 = vmatmul.mubr.msk.f32.gmra.mxu0 %vm308_vm0, %v285_v10  ;;  %1651 = vmatprep.subr.mxu1 %v899_v30 }
  0x3e   : > { %433 = vmatprep.mubr.f32.mxu0 %v1944_v4  ;;  %942 = vmatpush1.msra.mxu0 %v891_v31 }
  0x3f   : > { %1652 = vmatpush3.msra.mxu1 %v899_v30  ;;  %943 = vmatprep.subr.mxu0 %v889_v32 }
  0x40   : > { %1653 = vmatprep.subr.mxu1 %v896_v33  ;;  %944 = vmatpush1.msra.mxu0 %v888_v34 }
  0x41   : > { %1552 = vmatmul.mubr.msk.f32.gmra.mxu0 %vm308_vm0, %v286_v11  ;;  %1654 = vmatpush3.msra.mxu1 %v896_v33 }
  0x42   : > { %439 = vmatprep.mubr.f32.mxu0 %v1944_v4  ;;  %945 = vmatprep.subr.mxu0 %v886_v35 }
  0x43   : > { %1655 = vmatprep.subr.mxu1 %v893_v36  ;;  %946 = vmatpush1.msra.mxu0 %v885_v37 }
  0x44   : > { %1656 = vmatpush3.msra.mxu1 %v893_v36  ;;  %947 = vmatprep.subr.mxu0 %v883_v38 }
  0x45   : > { %1553 = vmatmul.mubr.msk.f32.gmra.mxu0 %vm308_vm0, %v287_v12  ;;  %1657 = vmatprep.subr.mxu1 %v890_v39 }
  0x46   : > { %993 = vmatprep.mubr.f32.mxu0 %v1944_v4  ;;  %948 = vmatpush1.msra.mxu0 %v882_v40 }
  0x47   : > { %1658 = vmatpush3.msra.mxu1 %v890_v39  ;;  %949 = vmatprep.subr.mxu0 %v880_v41 }
  0x48   : > { %1659 = vmatprep.subr.mxu1 %v887_v42  ;;  %950 = vmatpush1.msra.mxu0 %v879_v43 }
  0x49   : > { %1660 = vmatpush3.msra.mxu1 %v887_v42  ;;  %951 = vmatprep.subr.mxu0 %v877_v44 }
  0x4a   : > { %1661 = vmatprep.subr.mxu1 %v884_v45  ;;  %952 = vmatpush1.msra.mxu0 %v876_v46 }
  0x4b   : > { %1662 = vmatpush3.msra.mxu1 %v884_v45  ;;  %953 = vmatprep.subr.mxu0 %v874_v47 }
  0x4c   : > { %1663 = vmatprep.subr.mxu1 %v881_v48  ;;  %954 = vmatpush1.msra.mxu0 %v873_v49 }
  0x4d   : > { %1664 = vmatpush3.msra.mxu1 %v881_v48  ;;  %955 = vmatprep.subr.mxu0 %v871_v50 }
  0x4e   : > { %1665 = vmatprep.subr.mxu1 %v878_v51  ;;  %956 = vmatpush1.msra.mxu0 %v870_v52 }
  0x4f   : > { %1666 = vmatpush3.msra.mxu1 %v878_v51  ;;  %957 = vmatprep.subr.mxu0 %v868_v53  ;;  %v295_v51 = vsub.s32 0, %v2071_v62 }
  0x50   : > { %1667 = vmatprep.subr.mxu1 %v875_v54  ;;  %958 = vmatpush1.msra.mxu0 %v867_v55 }
  0x51   : > { %1668 = vmatpush3.msra.mxu1 %v875_v54  ;;  %959 = vmatprep.subr.mxu0 %v865_v56 }
  0x52   : > { %1669 = vmatprep.subr.mxu1 %v872_v57  ;;  %960 = vmatpush1.msra.mxu0 %v864_v58 }
  0x53   : > { %1670 = vmatpush3.msra.mxu1 %v872_v57 }
  0x54   : > { %1671 = vmatprep.subr.mxu1 %v869_v59 }
  0x55   : > { %1672 = vmatpush3.msra.mxu1 %v869_v59 }
  0x56   : > { %1673 = vmatprep.subr.mxu1 %v866_v60 }
  0x57   : > { %1674 = vmatpush3.msra.mxu1 %v866_v60  ;;  %v2123_v60 = vrot.slane %v2077_v0, %v295_v51 }
  0xe9   : > { %v2084_v2 = vpop.f32.mrf.mxu0 }
  0xeb   : > { %v401_v3 = vpop.f32.mrf.mxu0  ;;  %v1633_v11 = vpop.f32.mrf.mxu1 }
  0xec   : > { %v402_v5 = vadd.f32 %v401_v3, %v2082_v1  ;;  %v518_v27 = vadd.f32 %v1633_v11, %v2096_v15 }
  0xed   : > { %v2087_v6 = vpop.f32.mrf.mxu0  ;;  %v512_v17 = vpop.f32.mrf.mxu1 }
  0xee   : > { %v1562_v7 = vmul.f32 -1.442695, %v402_v5  ;;  %v513_v21 = vadd.f32 %v512_v17, %v2096_v15  ;;  %v1565_v35 = vmul.f32 -1.442695, %v518_v27 }
  0xef   : > { %v407_v8 = vpop.f32.mrf.mxu0  ;;  %v1636_v23 = vpop.f32.mrf.mxu1 }
  0xf0   : > { %1726 = vpow2.f32 %v1562_v7  ;;  %v408_v10 = vadd.f32 %v407_v8, %v2082_v1  ;;  %v1563_v28 = vmul.f32 -1.442695, %v513_v21  ;;  %v528_v45 = vadd.f32 %v1636_v23, %v2096_v15 }
  0xf1   : > { %v2091_v12 = vpop.f32.mrf.mxu0  ;;  %v522_v30 = vpop.f32.mrf.mxu1 }
  0xf2   : > { %v1564_v13 = vmul.f32 -1.442695, %v408_v10  ;;  %v523_v37 = vadd.f32 %v522_v30, %v2096_v15  ;;  %v1569_v54 = vmul.f32 -1.442695, %v528_v45 }
  0xf3   : > { %v413_v14 = vpop.f32.mrf.mxu0  ;;  %v1639_v41 = vpop.f32.mrf.mxu1 }
  0xf4   : > { %1728 = vpow2.f32 %v1564_v13  ;;  %v414_v16 = vadd.f32 %v413_v14, %v2082_v1  ;;  %v1567_v46 = vmul.f32 -1.442695, %v523_v37  ;;  %v538_v5 = vadd.f32 %v1639_v41, %v2096_v15 }
  0xf5   : > { %v2099_v18 = vpop.f32.mrf.mxu0  ;;  %v532_v50 = vpop.f32.mrf.mxu1  ;;  %v400_v14 = vadd.f32 %v2084_v2, %v2123_v60 }
  0xf6   : > { %v1566_v19 = vmul.f32 -1.442695, %v414_v16  ;;  %v533_v58 = vadd.f32 %v532_v50, %v2096_v15  ;;  %v1573_v17 = vmul.f32 -1.442695, %v538_v5  ;;  %v418_v50 = vadd.f32 %v2099_v18, %v2123_v60 }
  0xf7   : > { %v419_v20 = vpop.f32.mrf.mxu0  ;;  %v1642_v56 = vpop.f32.mrf.mxu1 }
  0xf8   : > { %1730 = vpow2.f32 %v1566_v19  ;;  %v420_v22 = vadd.f32 %v419_v20, %v2082_v1  ;;  %v1571_v10 = vmul.f32 -1.442695, %v533_v58  ;;  %v548_v27 = vadd.f32 %v1642_v56, %v2096_v15 }
  0xf9   : > { %v2103_v24 = vpop.f32.mrf.mxu0  ;;  %v542_v7 = vpop.f32.mrf.mxu1 }
  0xfa   : > { %v1568_v25 = vmul.f32 -1.442695, %v420_v22  ;;  %v543_v0 = vadd.f32 %v542_v7, %v2096_v15  ;;  %v1577_v41 = vmul.f32 -1.442695, %v548_v27 }
  0xfb   : > { %v425_v26 = vpop.f32.mrf.mxu0 }
  0xfc   : > { %1732 = vpow2.f32 %v1568_v25  ;;  %v426_v29 = vadd.f32 %v425_v26, %v2082_v1  ;;  %v406_v26 = vadd.f32 %v2087_v6, %v2123_v60  ;;  %v1575_v30 = vmul.f32 -1.442695, %v543_v0 }
  0xfd   : > { %v1727_v31 = vpop.eup %1726  ;;  %v2107_v32 = vpop.f32.mrf.mxu0  ;;  %1734 = vpow2.f32 %v1563_v28 }
  0xfe   : > { %v639_v33 = vadd.f32 1.0, %v1727_v31  ;;  %v1570_v34 = vmul.f32 -1.442695, %v426_v29 }
  0xff   : > { %v431_v36 = vpop.f32.mrf.mxu0 }
 0x100   : > { %1736 = vrcp.f32 %v639_v33  ;;  %v432_v38 = vadd.f32 %v431_v36, %v2082_v1 }
 0x101   : > { %v1729_v39 = vpop.eup %1728  ;;  %1738 = vpow2.f32 %v1570_v34  ;;  %v2111_v40 = vpop.f32.mrf.mxu0 }
 0x102   : > { %v641_v42 = vadd.f32 1.0, %v1729_v39  ;;  %v1572_v43 = vmul.f32 -1.442695, %v432_v38  ;;  %1740 = vpow2.f32 %v1565_v35  ;;  %v412_v38 = vadd.f32 %v2091_v12, %v2123_v60 }
 0x103   : > { %v437_v44 = vpop.f32.mrf.mxu0  ;;  %v436_v27 = vadd.f32 %v2111_v40, %v2123_v60 }
 0x104   : > { %1742 = vrcp.f32 %v641_v42  ;;  %v438_v47 = vadd.f32 %v437_v44, %v2082_v1 }
 0x105   : > { %v1731_v48 = vpop.eup %1730  ;;  %1744 = vpow2.f32 %v1572_v43  ;;  %v2115_v49 = vpop.f32.mrf.mxu0 }
 0x106   : > { %v643_v52 = vadd.f32 1.0, %v1731_v48  ;;  %v1574_v53 = vmul.f32 -1.442695, %v438_v47  ;;  %1746 = vpow2.f32 %v1567_v46 }
 0x107   : > { %v443_v55 = vpop.f32.mrf.mxu0 }
 0x108   : > { %1748 = vrcp.f32 %v643_v52  ;;  %v444_v57 = vadd.f32 %v443_v55, %v2082_v1  ;;  %v743_v1 = vld [vmem:[#allocation2] sm:$0xff] }
 0x109   : > { %v1733_v59 = vpop.eup %1732  ;;  %1750 = vpow2.f32 %v1574_v53 }
 0x10a   : > { %v645_v61 = vadd.f32 1.0, %v1733_v59  ;;  %v1576_v3 = vmul.f32 -1.442695, %v444_v57  ;;  %1752 = vpow2.f32 %v1569_v54  ;;  %v1735_v8 = vpop.eup %1734 }
 0x10b   : > { %v640_v20 = vadd.f32 1.0, %v1735_v8 }
 0x10c   : > { %1754 = vrcp.f32 %v645_v61 }
 0x10d   : > { %v1737_v11 = vpop.eup %1736  ;;  %1756 = vpow2.f32 %v1576_v3  ;;  %v424_v3 = vadd.f32 %v2103_v24, %v2123_v60 }
 0x10e   : > { %v1739_v13 = vpop.eup %1738  ;;  %v711_v16 = vsub.f32 1.0, %v1737_v11  ;;  %v748_v23 = vmul.f32 %v1737_v11, %v743_v1  ;;  %1758 = vpow2.f32 %v1571_v10 }
 0x10f   : > { %v647_v19 = vadd.f32 1.0, %v1739_v13  ;;  %v1741_v21 = vpop.eup %1740 }
 0x110   : > { %v727_v22 = vmul.f32 %v711_v16, %v400_v14  ;;  %v642_v31 = vadd.f32 1.0, %v1741_v21  ;;  %v430_v16 = vadd.f32 %v2107_v32, %v2123_v60 }
 0x111   : > { %v1743_v25 = vpop.eup %1742  ;;  %1760 = vrcp.f32 %v647_v19 }
 0x112   : > { %v1745_v28 = vpop.eup %1744  ;;  %v712_v29 = vsub.f32 1.0, %v1743_v25  ;;  %v750_v2 = vadd.f32 %v748_v23, %v727_v22  ;;  %1762 = vpow2.f32 %v1573_v17 }
 0x113   : > { %1764 = vrcp.f32 %v640_v20  ;;  %v649_v33 = vadd.f32 1.0, %v1745_v28  ;;  %v1747_v34 = vpop.eup %1746 }
 0x114   : > { %v728_v35 = vmul.f32 %v712_v29, %v406_v26  ;;  %v756_v36 = vmul.f32 %v1743_v25, %v750_v2  ;;  %1766 = vtanh.f32 %v750_v2  ;;  %v644_v43 = vadd.f32 1.0, %v1747_v34 }
 0x115   : > { %v1749_v37 = vpop.eup %1748  ;;  %1768 = vrcp.f32 %v649_v33 }
 0x116   : > { %v1751_v6 = vpop.eup %1750  ;;  %v713_v39 = vsub.f32 1.0, %v1749_v37  ;;  %v759_v15 = vadd.f32 %v756_v36, %v728_v35  ;;  %1770 = vpow2.f32 %v1575_v30  ;;  %v442_v36 = vadd.f32 %v2115_v49, %v2123_v60 }
 0x117   : > { %1772 = vrcp.f32 %v642_v31  ;;  %v651_v42 = vadd.f32 1.0, %v1751_v6  ;;  %v1753_v44 = vpop.eup %1752 }
 0x118   : > { %v729_v45 = vmul.f32 %v713_v39, %v412_v38  ;;  %v765_v46 = vmul.f32 %v1749_v37, %v759_v15  ;;  %1774 = vtanh.f32 %v759_v15  ;;  %v646_v53 = vadd.f32 1.0, %v1753_v44 }
 0x119   : > { %v1755_v47 = vpop.eup %1754  ;;  %1776 = vrcp.f32 %v651_v42 }
 0x11a   : > { %v1757_v48 = vpop.eup %1756  ;;  %v714_v12 = vsub.f32 1.0, %v1755_v47  ;;  %v768_v52 = vadd.f32 %v765_v46, %v729_v45  ;;  %1778 = vpow2.f32 %v1577_v41 }
 0x11b   : > { %1780 = vrcp.f32 %v644_v43  ;;  %v653_v54 = vadd.f32 1.0, %v1757_v48  ;;  %v1759_v57 = vpop.eup %1758 }
 0x11c   : > { %v730_v55 = vmul.f32 %v714_v12, %v418_v50  ;;  %v774_v56 = vmul.f32 %v1755_v47, %v768_v52  ;;  %1782 = vtanh.f32 %v768_v52  ;;  %v648_v8 = vadd.f32 1.0, %v1759_v57 }
 0x11d   : > { %1784 = vrcp.f32 %v653_v54 }
 0x11e   : > { %v1761_v58 = vpop.eup %1760  ;;  %v777_v59 = vadd.f32 %v774_v56, %v730_v55  ;;  %1786 = vrcp.f32 %v646_v53  ;;  %v2154_v55 = vld [vmem:[%s2240_s4] sm:$0x7] }
 0x11f   : > { %v1763_v61 = vpop.eup %1762  ;;  %v715_v5 = vsub.f32 1.0, %v1761_v58  ;;  %v2159_v56 = vrot.slane %v2154_v55, %v299_v63  ;;  %v2172_v63 = vrot.slane %v2154_v55, %v303_v9 }
 0x120   : > { %v1765_v18 = vpop.eup %1764  ;;  %v783_v7 = vmul.f32 %v1761_v58, %v777_v59  ;;  %1788 = vtanh.f32 %v777_v59  ;;  %v650_v20 = vadd.f32 1.0, %v1763_v61 }
 0x121   : > { %v1767_v10 = vpop.eup %1766  ;;  %v731_v11 = vmul.f32 %v715_v5, %v424_v3  ;;  %1790 = vrcp.f32 %v648_v8 }
 0x122   : > { %v1769_v1 = vpop.eup %1768  ;;  %v840_v13 = vmul.f32 %v1767_v10, %v1765_v18 }
 0x123   : > { %v1771_v14 = vpop.eup %1770  ;;  %v716_v17 = vsub.f32 1.0, %v1769_v1  ;;  %v786_v0 = vadd.f32 %v783_v7, %v731_v11 }
 0x124   : > { %v1773_v19 = vpop.eup %1772  ;;  %994 = vmatmul.mubr.f32.vlgmr.msra.gmra.mxu0 %v840_v13  ;;  %1675 = vmatprep.mubr.f32.mxu1 %v840_v13  ;;  %v652_v2 = vadd.f32 1.0, %v1771_v14 }
 0x125   : > { %v1775_v24 = vpop.eup %1774  ;;  %v732_v21 = vmul.f32 %v716_v17, %v430_v16  ;;  %v792_v22 = vmul.f32 %v1769_v1, %v786_v0  ;;  %999 = vmatprep.mubr.f32.mxu0 %v1944_v4  ;;  %1792 = vtanh.f32 %v786_v0 }
 0x126   : > { %v1777_v23 = vpop.eup %1776  ;;  %v841_v25 = vmul.f32 %v1775_v24, %v1773_v19  ;;  %1794 = vrcp.f32 %v650_v20 }
 0x127   : > { %v1779_v26 = vpop.eup %1778  ;;  %v717_v32 = vsub.f32 1.0, %v1777_v23  ;;  %v795_v28 = vadd.f32 %v792_v22, %v732_v21 }
 0x128   : > { %v1781_v29 = vpop.eup %1780  ;;  %1000 = vmatmul.mubr.f32.gmra.mxu0 %v841_v25  ;;  %1676 = vmatmul.mubr.f32.vlgmr.msra.gmra.mxu1 %v841_v25  ;;  %v654_v6 = vadd.f32 1.0, %v1779_v26 }
 0x129   : > { %v1783_v30 = vpop.eup %1782  ;;  %v733_v31 = vmul.f32 %v717_v32, %v436_v27  ;;  %v801_v33 = vmul.f32 %v1777_v23, %v795_v28  ;;  %1005 = vmatprep.mubr.f32.mxu0 %v1944_v4  ;;  %1796 = vtanh.f32 %v795_v28 }
 0x12a   : > { %v1785_v34 = vpop.eup %1784  ;;  %v842_v35 = vmul.f32 %v1783_v30, %v1781_v29  ;;  %1798 = vrcp.f32 %v652_v2 }
 0x12b   : > { %v718_v37 = vsub.f32 1.0, %v1785_v34  ;;  %v804_v40 = vadd.f32 %v801_v33, %v733_v31  ;;  %v1787_v38 = vpop.eup %1786 }
 0x12c   : > { %1006 = vmatmul.mubr.f32.gmra.mxu0 %v842_v35  ;;  %1678 = vmatprep.mubr.f32.mxu1 %v842_v35 }
 0x12d   : > { %v1789_v39 = vpop.eup %1788  ;;  %v734_v15 = vmul.f32 %v718_v37, %v442_v36  ;;  %v810_v41 = vmul.f32 %v1785_v34, %v804_v40  ;;  %1011 = vmatprep.mubr.f32.mxu0 %v1944_v4  ;;  %1800 = vtanh.f32 %v804_v40 }
 0x12e   : > { %v843_v42 = vmul.f32 %v1789_v39, %v1787_v38  ;;  %1802 = vrcp.f32 %v654_v6  ;;  %v1791_v44 = vpop.eup %1790 }
 0x12f   : > { %v813_v43 = vadd.f32 %v810_v41, %v734_v15 }
 0x130   : > { %1012 = vmatmul.mubr.f32.gmra.mxu0 %v843_v42  ;;  %1679 = vmatmul.mubr.f32.gmra.mxu1 %v843_v42 }
 0x131   : > { %1017 = vmatprep.mubr.f32.mxu0 %v1944_v4  ;;  %815 = vst [vmem:[#allocation2] sm:$0xff] %v813_v43  ;;  %1804 = vtanh.f32 %v813_v43 }
 0x132   : > { %v1793_v49 = vpop.eup %1792 }
 0x133   : > { %v844_v60 = vmul.f32 %v1793_v49, %v1791_v44  ;;  %v1795_v45 = vpop.eup %1794 }
 0x135   : > { %1018 = vmatmul.mubr.f32.gmra.mxu0 %v844_v60  ;;  %1681 = vmatprep.mubr.f32.mxu1 %v844_v60 }
 0x136   : > { %v1797_v46 = vpop.eup %1796  ;;  %1023 = vmatprep.mubr.f32.mxu0 %v1944_v4 }
 0x137   : > { %v845_v47 = vmul.f32 %v1797_v46, %v1795_v45  ;;  %v1799_v48 = vpop.eup %1798 }
 0x139   : > { %1024 = vmatmul.mubr.f32.gmra.mxu0 %v845_v47  ;;  %1682 = vmatmul.mubr.f32.gmra.mxu1 %v845_v47 }
 0x13a   : > { %v1801_v50 = vpop.eup %1800  ;;  %1029 = vmatprep.mubr.f32.mxu0 %v1944_v4 }
 0x13b   : > { %v846_v12 = vmul.f32 %v1801_v50, %v1799_v48  ;;  %v1803_v52 = vpop.eup %1802  ;;  %v2198_v50 = vrot.slane %v2154_v55, %v295_v51 }
 0x13d   : > { %1030 = vmatmul.mubr.f32.gmra.mxu0 %v846_v12  ;;  %1684 = vmatprep.mubr.f32.mxu1 %v846_v12 }
 0x13e   : > { %v1805_v53 = vpop.eup %1804  ;;  %1035 = vmatprep.mubr.f32.mxu0 %v1944_v4 }
 0x13f   : > { %v847_v54 = vmul.f32 %v1805_v53, %v1803_v52 }
 0x141   : > { %1036 = vmatmul.mubr.f32.gmra.mxu0 %v847_v54  ;;  %1685 = vmatmul.mubr.f32.gmra.mxu1 %v847_v54 }
 0x1e4   : > { %v2161_v57 = vpop.f32.mrf.mxu0 }
 0x1e6   : > { %v997_v58 = vpop.f32.mrf.mxu0 }
 0x1e7   : > { %v998_v59 = vadd.f32 %v997_v58, %v2159_v56 }
 0x1e8   : > { %v2164_v61 = vpop.f32.mrf.mxu0  ;;  %v1677_v5 = vpop.f32.mrf.mxu1 }
 0x1e9   : > { %v1578_v4 = vmul.f32 -1.442695, %v998_v59  ;;  %v1114_v14 = vadd.f32 %v1677_v5, %v2172_v63 }
 0x1ea   : > { %v1003_v3 = vpop.f32.mrf.mxu0  ;;  %v1108_v11 = vpop.f32.mrf.mxu1 }
 0x1eb   : > { %1806 = vpow2.f32 %v1578_v4  ;;  %v1004_v18 = vadd.f32 %v1003_v3, %v2159_v56  ;;  %v1109_v17 = vadd.f32 %v1108_v11, %v2172_v63  ;;  %v1581_v9 = vmul.f32 -1.442695, %v1114_v14  ;;  %v1339_v3 = vld [vmem:[#allocation3] sm:$0xff] }
 0x1ec   : > { %v2167_v7 = vpop.f32.mrf.mxu0 }
 0x1ed   : > { %v1580_v8 = vmul.f32 -1.442695, %v1004_v18  ;;  %v1579_v22 = vmul.f32 -1.442695, %v1109_v17  ;;  %v1002_v17 = vadd.f32 %v2164_v61, %v2198_v50 }
 0x1ee   : > { %v1009_v10 = vpop.f32.mrf.mxu0 }
 0x1ef   : > { %1808 = vpow2.f32 %v1580_v8  ;;  %v1010_v1 = vadd.f32 %v1009_v10, %v2159_v56 }
 0x1f0   : > { %v2175_v13 = vpop.f32.mrf.mxu0  ;;  %v1680_v19 = vpop.f32.mrf.mxu1 }
 0x1f1   : > { %v1582_v16 = vmul.f32 -1.442695, %v1010_v1  ;;  %v1124_v37 = vadd.f32 %v1680_v19, %v2172_v63 }
 0x1f2   : > { %v1015_v0 = vpop.f32.mrf.mxu0  ;;  %v1118_v23 = vpop.f32.mrf.mxu1 }
 0x1f3   : > { %1810 = vpow2.f32 %v1582_v16  ;;  %v1016_v20 = vadd.f32 %v1015_v0, %v2159_v56  ;;  %v1119_v29 = vadd.f32 %v1118_v23, %v2172_v63  ;;  %v1585_v44 = vmul.f32 -1.442695, %v1124_v37 }
 0x1f5   : > { %v1584_v24 = vmul.f32 -1.442695, %v1016_v20  ;;  %v2180_v21 = vpop.f32.mrf.mxu0  ;;  %v1583_v40 = vmul.f32 -1.442695, %v1119_v29 }
 0x1f7   : > { %1812 = vpow2.f32 %v1584_v24  ;;  %v1021_v25 = vpop.f32.mrf.mxu0 }
 0x1f8   : > { %v1807_v26 = vpop.eup %1806  ;;  %v1022_v27 = vadd.f32 %v1021_v25, %v2159_v56  ;;  %1814 = vpow2.f32 %v1581_v9 }
 0x1f9   : > { %v1235_v32 = vadd.f32 1.0, %v1807_v26  ;;  %v2183_v28 = vpop.f32.mrf.mxu0  ;;  %1816 = vpow2.f32 %v1579_v22  ;;  %v1683_v33 = vpop.f32.mrf.mxu1 }
 0x1fa   : > { %v1586_v2 = vmul.f32 -1.442695, %v1022_v27  ;;  %v1134_v5 = vadd.f32 %v1683_v33, %v2172_v63 }
 0x1fb   : > { %1818 = vrcp.f32 %v1235_v32  ;;  %v1027_v30 = vpop.f32.mrf.mxu0  ;;  %v1128_v15 = vpop.f32.mrf.mxu1  ;;  %v1008_v32 = vadd.f32 %v2167_v7, %v2198_v50 }
 0x1fc   : > { %v1809_v31 = vpop.eup %1808  ;;  %1820 = vpow2.f32 %v1586_v2  ;;  %v1028_v34 = vadd.f32 %v1027_v30, %v2159_v56  ;;  %v1129_v60 = vadd.f32 %v1128_v15, %v2172_v63  ;;  %v1589_v16 = vmul.f32 -1.442695, %v1134_v5 }
 0x1fd   : > { %v1237_v35 = vadd.f32 1.0, %v1809_v31  ;;  %v2187_v36 = vpop.f32.mrf.mxu0 }
 0x1fe   : > { %v1588_v38 = vmul.f32 -1.442695, %v1028_v34  ;;  %v1587_v58 = vmul.f32 -1.442695, %v1129_v60 }
 0x1ff   : > { %1822 = vrcp.f32 %v1237_v35  ;;  %v1033_v6 = vpop.f32.mrf.mxu0 }
 0x200   : > { %v1811_v39 = vpop.eup %1810  ;;  %v1034_v41 = vadd.f32 %v1033_v6, %v2159_v56  ;;  %1824 = vpow2.f32 %v1588_v38 }
 0x201   : > { %v1239_v42 = vadd.f32 1.0, %v1811_v39  ;;  %v2191_v43 = vpop.f32.mrf.mxu0  ;;  %1826 = vpow2.f32 %v1583_v40  ;;  %v1686_v45 = vpop.f32.mrf.mxu1 }
 0x202   : > { %v1590_v49 = vmul.f32 -1.442695, %v1034_v41  ;;  %v1144_v26 = vadd.f32 %v1686_v45, %v2172_v63 }
 0x203   : > { %1828 = vrcp.f32 %v1239_v42  ;;  %v1039_v46 = vpop.f32.mrf.mxu0  ;;  %v1138_v59 = vpop.f32.mrf.mxu1 }
 0x204   : > { %v1813_v47 = vpop.eup %1812  ;;  %1830 = vpow2.f32 %v1590_v49  ;;  %v1040_v48 = vadd.f32 %v1039_v46, %v2159_v56  ;;  %v996_v56 = vadd.f32 %v2161_v57, %v2198_v50  ;;  %v1139_v10 = vadd.f32 %v1138_v59, %v2172_v63 }
 0x205   : > { %v1241_v12 = vadd.f32 1.0, %v1813_v47  ;;  %v1815_v52 = vpop.eup %1814  ;;  %1832 = vpow2.f32 %v1585_v44  ;;  %v1593_v37 = vmul.f32 -1.442695, %v1144_v26  ;;  %v1014_v63 = vadd.f32 %v2175_v13, %v2198_v50 }
 0x206   : > { %v1592_v53 = vmul.f32 -1.442695, %v1040_v48  ;;  %v1817_v54 = vpop.eup %1816  ;;  %v1238_v8 = vadd.f32 1.0, %v1815_v52  ;;  %v1591_v20 = vmul.f32 -1.442695, %v1139_v10  ;;  %v1020_v13 = vadd.f32 %v2180_v21, %v2198_v50 }
 0x207   : > { %1834 = vrcp.f32 %v1241_v12  ;;  %v1236_v51 = vadd.f32 1.0, %v1817_v54 }
 0x208   : > { %v1819_v4 = vpop.eup %1818  ;;  %1836 = vpow2.f32 %v1592_v53 }
 0x209   : > { %v1821_v18 = vpop.eup %1820  ;;  %v1307_v62 = vsub.f32 1.0, %v1819_v4  ;;  %v1341_v1 = vmul.f32 %v1819_v4, %v1339_v3  ;;  %1838 = vpow2.f32 %v1587_v58  ;;  %v1026_v3 = vadd.f32 %v2183_v28, %v2198_v50 }
 0x20a   : > { %v1243_v55 = vadd.f32 1.0, %v1821_v18 }
 0x20b   : > { %v1323_v11 = vmul.f32 %v1307_v62, %v996_v56 }
 0x20c   : > { %v1823_v14 = vpop.eup %1822  ;;  %1840 = vrcp.f32 %v1243_v55  ;;  %v1032_v55 = vadd.f32 %v2187_v36, %v2198_v50 }
 0x20d   : > { %1842 = vrcp.f32 %v1238_v8  ;;  %v1308_v0 = vsub.f32 1.0, %v1823_v14  ;;  %v1343_v19 = vadd.f32 %v1341_v1, %v1323_v11  ;;  %v1825_v57 = vpop.eup %1824 }
 0x20e   : > { %1844 = vrcp.f32 %v1236_v51  ;;  %v1827_v9 = vpop.eup %1826  ;;  %v1245_v23 = vadd.f32 1.0, %v1825_v57 }
 0x20f   : > { %v1324_v24 = vmul.f32 %v1308_v0, %v1002_v17  ;;  %v1346_v22 = vmul.f32 %v1823_v14, %v1343_v19  ;;  %1846 = vtanh.f32 %v1343_v19  ;;  %v1240_v2 = vadd.f32 1.0, %v1827_v9 }
 0x210   : > { %v1829_v25 = vpop.eup %1828  ;;  %1848 = vpow2.f32 %v1589_v16  ;;  %v1038_v9 = vadd.f32 %v2191_v43, %v2198_v50 }
 0x211   : > { %v1831_v27 = vpop.eup %1830  ;;  %v1309_v61 = vsub.f32 1.0, %v1829_v25  ;;  %v1348_v29 = vadd.f32 %v1346_v22, %v1324_v24  ;;  %1850 = vrcp.f32 %v1245_v23 }
 0x212   : > { %v1247_v30 = vadd.f32 1.0, %v1831_v27  ;;  %1852 = vpow2.f32 %v1591_v20  ;;  %v1833_v31 = vpop.eup %1832 }
 0x213   : > { %v1325_v33 = vmul.f32 %v1309_v61, %v1008_v32  ;;  %v1351_v34 = vmul.f32 %v1829_v25, %v1348_v29  ;;  %1854 = vtanh.f32 %v1348_v29  ;;  %v1242_v7 = vadd.f32 1.0, %v1833_v31 }
 0x214   : > { %v1835_v35 = vpop.eup %1834  ;;  %1856 = vrcp.f32 %v1247_v30 }
 0x215   : > { %v1310_v40 = vsub.f32 1.0, %v1835_v35  ;;  %v1353_v38 = vadd.f32 %v1351_v34, %v1325_v33  ;;  %v1837_v6 = vpop.eup %1836  ;;  %1858 = vrcp.f32 %v1240_v2 }
 0x216   : > { %v1249_v41 = vadd.f32 1.0, %v1837_v6  ;;  %v1839_v42 = vpop.eup %1838 }
 0x217   : > { %v1326_v39 = vmul.f32 %v1310_v40, %v1014_v63  ;;  %v1356_v15 = vmul.f32 %v1835_v35, %v1353_v38  ;;  %1860 = vtanh.f32 %v1353_v38  ;;  %v1244_v48 = vadd.f32 1.0, %v1839_v42 }
 0x218   : > { %1862 = vpow2.f32 %v1593_v37 }
 0x219   : > { %v1841_v44 = vpop.eup %1840  ;;  %v1358_v49 = vadd.f32 %v1356_v15, %v1326_v39  ;;  %1864 = vrcp.f32 %v1249_v41 }
 0x21a   : > { %v1843_v60 = vpop.eup %1842  ;;  %1866 = vrcp.f32 %v1242_v7  ;;  %v1311_v45 = vsub.f32 1.0, %v1841_v44 }
 0x21b   : > { %v1845_v46 = vpop.eup %1844  ;;  %v1361_v47 = vmul.f32 %v1841_v44, %v1358_v49  ;;  %1868 = vtanh.f32 %v1358_v49 }
 0x21c   : > { %v1847_v12 = vpop.eup %1846  ;;  %v1327_v52 = vmul.f32 %v1311_v45, %v1020_v13  ;;  %1870 = vrcp.f32 %v1244_v48 }
 0x21d   : > { %v1849_v53 = vpop.eup %1848  ;;  %v1405_v54 = vmul.f32 %v1847_v12, %v1845_v46 }
 0x21e   : > { %v1851_v58 = vpop.eup %1850  ;;  %v1363_v59 = vadd.f32 %v1361_v47, %v1327_v52  ;;  %v1246_v18 = vadd.f32 1.0, %v1849_v53 }
 0x21f   : > { %v1853_v4 = vpop.eup %1852  ;;  %1429 = vst [vmem:[%s2026_s14] sm:$0xff] %v1405_v54  ;;  %v1312_v5 = vsub.f32 1.0, %v1851_v58 }
 0x220   : > { %v1855_v21 = vpop.eup %1854  ;;  %v1366_v56 = vmul.f32 %v1851_v58, %v1363_v59  ;;  %1872 = vtanh.f32 %v1363_v59  ;;  %v1248_v16 = vadd.f32 1.0, %v1853_v4 }
 0x221   : > { %v1857_v62 = vpop.eup %1856  ;;  %v1406_v8 = vmul.f32 %v1855_v21, %v1843_v60  ;;  %v1328_v51 = vmul.f32 %v1312_v5, %v1026_v3  ;;  %1874 = vrcp.f32 %v1246_v18 }
 0x222   : > { %v1313_v10 = vsub.f32 1.0, %v1857_v62  ;;  %v1859_v11 = vpop.eup %1858 }
 0x223   : > { %1430 = vst [vmem:[%s2026_s14 + $0x8] sm:$0xff] %v1406_v8  ;;  %v1368_v1 = vadd.f32 %v1366_v56, %v1328_v51 }
 0x224   : > { %v1861_v14 = vpop.eup %1860  ;;  %v1329_v28 = vmul.f32 %v1313_v10, %v1032_v55 }
 0x225   : > { %v1863_v17 = vpop.eup %1862  ;;  %v1407_v0 = vmul.f32 %v1861_v14, %v1859_v11  ;;  %v1371_v19 = vmul.f32 %v1857_v62, %v1368_v1  ;;  %1876 = vtanh.f32 %v1368_v1 }
 0x226   : > { %v1865_v57 = vpop.eup %1864  ;;  %v1250_v23 = vadd.f32 1.0, %v1863_v17  ;;  %1878 = vrcp.f32 %v1248_v16 }
 0x227   : > { %v1867_v20 = vpop.eup %1866  ;;  %1431 = vst [vmem:[%s2026_s14 + $0x10] sm:$0xff] %v1407_v0  ;;  %v1314_v36 = vsub.f32 1.0, %v1865_v57  ;;  %v1373_v24 = vadd.f32 %v1371_v19, %v1329_v28 }
 0x228   : > { %v1869_v22 = vpop.eup %1868 }
 0x229   : > { %v1408_v25 = vmul.f32 %v1869_v22, %v1867_v20  ;;  %v1330_v26 = vmul.f32 %v1314_v36, %v1038_v9  ;;  %v1376_v27 = vmul.f32 %v1865_v57, %v1373_v24  ;;  %1880 = vtanh.f32 %v1373_v24  ;;  %v1871_v61 = vpop.eup %1870 }
 0x22a   : > { %1882 = vrcp.f32 %v1250_v23 }
 0x22b   : > { %1432 = vst [vmem:[%s2026_s14 + $0x18] sm:$0xff] %v1408_v25  ;;  %v1378_v32 = vadd.f32 %v1376_v27, %v1330_v26 }
 0x22d   : > { %v1873_v29 = vpop.eup %1872  ;;  %1380 = vst [vmem:[#allocation3] sm:$0xff] %v1378_v32  ;;  %1884 = vtanh.f32 %v1378_v32 }
 0x22e   : > { %v1409_v43 = vmul.f32 %v1873_v29, %v1871_v61  ;;  %v1875_v50 = vpop.eup %1874 }
 0x230   : > { %1433 = vst [vmem:[%s2026_s14 + $0x20] sm:$0xff] %v1409_v43 }
 0x232   : > { %v1877_v2 = vpop.eup %1876 }
 0x233   : > { %v1410_v30 = vmul.f32 %v1877_v2, %v1875_v50  ;;  %v1879_v31 = vpop.eup %1878 }
 0x235   : > { %1434 = vst [vmem:[%s2026_s14 + $0x28] sm:$0xff] %v1410_v30 }
 0x236   : > { %v1881_v33 = vpop.eup %1880 }
 0x237   : > { %v1411_v34 = vmul.f32 %v1881_v33, %v1879_v31  ;;  %v1883_v35 = vpop.eup %1882 }
 0x239   : > { %1435 = vst [vmem:[%s2026_s14 + $0x30] sm:$0xff] %v1411_v34 }
 0x23a   : > { %v1885_v37 = vpop.eup %1884 }
 0x23b   : > { %v1412_v63 = vmul.f32 %v1885_v37, %v1883_v35 }
 0x23d   : > { %1436 = vst [vmem:[%s2026_s14 + $0x38] sm:$0xff] %v1412_v63 }
 0x23e PF: > { %s16_s20 = sadd.s32 1, %s1938_s20   ;;  %s2244_s18 = smov %s1934_s19 }
 0x23f   : > { %p13_p3 = scmp.ge.s32.totalorder %s16_s20, 4   ;;  %s2245_s19 = smov %s2247_s22 }
 0x241   :  { %15 = sbr.rel (!%p13_p3) target bundleno = 2 (0x2), region = 94 }
 0x246   :  { %1465 = vsyncpa [#allocation7], 1 }
 0x247   :  { %1467 = vsyncpa [#allocation7 + $0x1], 1 }

</bundles_post_ra>
